<compile_context>
chip_gen: v6e
topology: v6e:2x2x1
jax: 0.10.0
libtpu: 0.0.40
codegen_flags: <defaults>
</compile_context>

<pallas_src>
import math
import numpy as np
import jax
import jax.numpy as jnp
from jax.experimental import pallas as pl
from jax.experimental.pallas import tpu as pltpu


def attn_decoder_kernel(x_ref, h0_ref, appc_ref, valid_ref,
                        wcx_ref, wih_ref, whh_ref, brnn_ref,
                        wout_ref, bout_ref,
                        y_ref):
    """One grid step == one block of batch rows; full (small) time loop in-kernel.

    x_ref   : (Bb, T*H) bf16  lane-dense decode_input
    h0_ref  : (Bb, H)    f32  initial hidden state
    appc_ref: (Bb, H)    f32  precomputed (sum_L enc) @ Wca + bc
    valid_ref:(Bb, T)    f32  1.0 while j < first_stop(row), else 0.0
    weights : wcx/wih/whh/wout (H, H) bf16, brnn/bout (1, H) f32
    y_ref   : (Bb, T*H)  f32  lane-dense output
    """
    H = h0_ref.shape[1]
    T = valid_ref.shape[1]
    bf16, f32 = jnp.bfloat16, jnp.float32

    # Tiny weights stay resident in vregs for the whole block.
    wcx = wcx_ref[...]
    wih = wih_ref[...]
    whh = whh_ref[...]
    wout = wout_ref[...]
    brnn = brnn_ref[...]          # (1, H) = b_ih + b_hh, pre-folded
    bout = bout_ref[...]          # (1, H)

    h = h0_ref[...]               # (Bb, H) f32 — the only loop-carried state

    # T is small and static -> full unroll; the LLO scheduler overlaps each step's
    # h-independent work (x@Wcx, relu, @Wih, out-projection, store) with the serial
    # tanh(h@Whh) chain of neighbouring steps.
    # TODO(synk): for large T switch to lax.fori_loop(..., unroll=True) with h kept in a
    # VMEM scratch instead of the Python unroll.
    for j in range(T):
        lo = j * H
        xj = x_ref[:, lo:lo + H]                                   # (Bb, H) bf16
        app_c = appc_ref[...]                                      # (Bb, H) f32 (per-step load
                                                                   #  keeps live ranges short)
        # ---- h-independent per-step pre-compute (off the serial chain) ----
        c = jnp.maximum(
            jnp.dot(xj, wcx, preferred_element_type=f32) + app_c, 0.0)       # relu, f32
        cw = jnp.dot(c.astype(bf16), wih, preferred_element_type=f32) + brnn  # (Bb, H) f32

        # ---- serial recurrence: only h @ Whh + tanh sits on the dependency chain ----
        hw = jnp.dot(h.astype(bf16), whh, preferred_element_type=f32)
        h = jnp.tanh(cw + hw)                                      # (Bb, H) f32

        # ---- output projection + masked lane-dense store (off the chain) ----
        o = jnp.dot(h.astype(bf16), wout, preferred_element_type=f32) + bout
        vj = valid_ref[:, j:j + 1]                                 # (Bb, 1) f32
        y_ref[:, lo:lo + H] = jnp.where(vj > 0.0, o, 0.0)


def _pick_b_blk(B: int) -> int:
    """Batch rows per grid step.

    Goal: fill MXU rows for the per-step (Bb, 32) @ (32, 32) matmuls (128 rows on v5e,
    up to 256 on v6e/v7x) while (a) keeping >= 2 grid blocks when possible so v7x can
    shard the parallel batch axis across its 2 TensorCores and (b) keeping vreg pressure
    from the 32-lane (quarter-used) operands manageable.  16-row granule so bf16 block
    sublanes tile cleanly.  VMEM is nowhere near a constraint at these sizes.
    """
    if B <= 8:
        return B
    half = (B // 2) // 16 * 16
    return int(max(16, min(128, half)))


def attn_decoder_forward(decode_input, decode_hidden, encode_outputs, params):
    B, T, H = decode_input.shape
    f32, bf16 = jnp.float32, jnp.bfloat16

    # ---------- wrapper-side (XLA) hoisted work ----------
    # Stop test on the ORIGINAL f32 input (exact-equality semantics of torch.mean == 0).
    row_mean = jnp.mean(decode_input.astype(f32), axis=-1)                    # (B, T)
    t_idx = jnp.arange(T, dtype=jnp.int32)[None, :]                           # (1, T)
    first_stop = jnp.min(jnp.where(row_mean == 0.0, t_idx, T), axis=-1)       # (B,)
    valid = (t_idx < first_stop[:, None]).astype(f32)                         # (B, T)

    # softmax(dim=0) on a (1, L) row == all-ones -> attn_applied = sum over L; the
    # `attn` Linear never affects the output.  Fold applied @ Wca + bc here in f32.
    applied = jnp.sum(encode_outputs.astype(f32), axis=1)                     # (B, H)
    app_c = applied @ params["wca"].astype(f32) + params["bc"].astype(f32)    # (B, H)

    x2d = decode_input.reshape(B, T * H).astype(bf16)    # lane-dense bf16 kernel input
    h0 = decode_hidden.astype(f32)

    # ---------- batch blocking ----------
    B_BLK = _pick_b_blk(B)
    B_pad = -(-B // B_BLK) * B_BLK
    if B_pad != B:
        pw = B_pad - B
        x2d = jnp.pad(x2d, ((0, pw), (0, 0)))
        h0 = jnp.pad(h0, ((0, pw), (0, 0)))
        app_c = jnp.pad(app_c, ((0, pw), (0, 0)))
        valid = jnp.pad(valid, ((0, pw), (0, 0)))        # padded rows -> valid == 0 -> zeros

    weights = (
        params["wcx"].astype(bf16),
        params["wih"].astype(bf16),
        params["whh"].astype(bf16),
        (params["bih"] + params["bhh"]).astype(f32),     # pre-folded rnn bias
        params["wout"].astype(bf16),
        params["bout"].astype(f32),
    )

    def row_spec(cols):
        return pl.BlockSpec((B_BLK, cols), lambda i: (i, 0))

    def w_spec(shape):
        return pl.BlockSpec(shape, lambda i: (0, 0))

    grid_spec = pltpu.PrefetchScalarGridSpec(
        num_scalar_prefetch=0,
        grid=(B_pad // B_BLK,),
        in_specs=[
            row_spec(T * H),                 # decode_input, bf16, lane-dense
            row_spec(H),                     # decode_hidden
            row_spec(H),                     # app_c (hoisted attention contribution)
            row_spec(T),                     # valid (stop-mask)
            w_spec((H, H)),                  # Wcombine_x^T
            w_spec((H, H)),                  # W_ih^T
            w_spec((H, H)),                  # W_hh^T
            w_spec((1, H)),                  # b_ih + b_hh
            w_spec((H, H)),                  # W_out^T
            w_spec((1, H)),                  # b_out
        ],
        out_specs=pl.BlockSpec((B_BLK, T * H), lambda i: (i, 0)),   # lane-dense output
    )

    y2d = pl.pallas_call(
        attn_decoder_kernel,
        out_shape=jax.ShapeDtypeStruct((B_pad, T * H), f32),
        grid_spec=grid_spec,
        compiler_params=pltpu.CompilerParams(
            dimension_semantics=("parallel",)),          # batch blocks independent (v7x: 2 TCs)
    )(x2d, h0, app_c, valid, *weights)

    return y2d[:B].reshape(B, T, H)


def init_params(key, hidden_size, max_length):
    H, L = hidden_size, max_length
    ks = jax.random.split(key, 10)

    def unif(k, shape, fan_in):
        bound = 1.0 / math.sqrt(fan_in)
        return jax.random.uniform(k, shape, jnp.float32, -bound, bound)

    # nn.Linear(2H, L): output annihilated by softmax(dim=0) on a (1, L) row;
    # kept only for shape fidelity (never used numerically).
    attn_w = unif(ks[0], (L, 2 * H), 2 * H)
    attn_b = unif(ks[1], (L,), 2 * H)
    comb_w = unif(ks[2], (H, 2 * H), 2 * H)    # nn.Linear(2H, H)
    comb_b = unif(ks[3], (H,), 2 * H)
    w_ih = unif(ks[4], (H, H), H)              # nn.RNN(H, H, 1), tanh
    w_hh = unif(ks[5], (H, H), H)
    b_ih = unif(ks[6], (H,), H)
    b_hh = unif(ks[7], (H,), H)
    out_w = unif(ks[8], (H, H), H)             # nn.Linear(H, H)
    out_b = unif(ks[9], (H,), H)

    return dict(
        attn_w=attn_w, attn_b=attn_b,
        wcx=comb_w[:, :H].T, wca=comb_w[:, H:].T, bc=comb_b.reshape(1, H),
        wih=w_ih.T, whh=w_hh.T, bih=b_ih.reshape(1, H), bhh=b_hh.reshape(1, H),
        wout=out_w.T, bout=out_b.reshape(1, H),
    )


def reference_forward(x, h0, enc, p):
    """Pure numpy f32 mirror of the PyTorch forward (for verification)."""
    x = np.asarray(x, np.float32)
    h0 = np.asarray(h0, np.float32)
    enc = np.asarray(enc, np.float32)
    wcx, wca, bc = np.asarray(p["wcx"]), np.asarray(p["wca"]), np.asarray(p["bc"])
    wih, whh = np.asarray(p["wih"]), np.asarray(p["whh"])
    bih, bhh = np.asarray(p["bih"]), np.asarray(p["bhh"])
    wout, bout = np.asarray(p["wout"]), np.asarray(p["bout"])

    B, T, H = x.shape
    y = np.zeros((B, T, H), np.float32)
    for i in range(B):
        h = h0[i:i + 1]
        applied = enc[i].sum(axis=0, keepdims=True)        # softmax(dim=0) == ones
        for j in range(T):
            xj = x[i, j].reshape(1, -1)
            if float(xj.mean()) == 0.0:
                break
            c = np.maximum(xj @ wcx + (applied @ wca + bc), 0.0)
            h = np.tanh(c @ wih + bih + h @ whh + bhh)
            y[i, j] = (h @ wout + bout)[0]
    return y


if __name__ == "__main__":
    H, L = 32, 16        # hidden_size, max_length
    T = 8                # decode_length

    key = jax.random.PRNGKey(0)
    kp, kx, kh, ke, kx2, kh2, ke2 = jax.random.split(key, 7)
    params = init_params(kp, H, L)

    # ---- Case 1: tiny batch (single block), data-dependent `break` at (i=1, j=3) ----
    B = 2
    decode_input = jax.random.normal(kx, (B, T, H), jnp.float32)
    decode_input = decode_input.at[1, 3].set(0.0)          # outputs for j >= 3 must be zero
    decode_hidden = jax.random.normal(kh, (B, H), jnp.float32)
    encode_outputs = jax.random.normal(ke, (B, L, H), jnp.float32)

    y = attn_decoder_forward(decode_input, decode_hidden, encode_outputs, params)
    y = jax.block_until_ready(y)
    y_ref = reference_forward(decode_input, decode_hidden, encode_outputs, params)
    # bf16 MXU operands (f32 accumulation) vs the f32 numpy reference -> loosened tolerance.
    np.testing.assert_allclose(np.asarray(y), y_ref, rtol=2e-2, atol=2e-2)

    # ---- Case 2: multi-block grid (exercises batch blocking, padding, 2-TC sharding path) ----
    B2 = 20
    x2 = jax.random.normal(kx2, (B2, T, H), jnp.float32)
    x2 = x2.at[3, 0].set(0.0)        # break at j=0 -> whole output row zero
    x2 = x2.at[11, 5].set(0.0)       # break mid-sequence
    h02 = jax.random.normal(kh2, (B2, H), jnp.float32)
    enc2 = jax.random.normal(ke2, (B2, L, H), jnp.float32)

    y2 = attn_decoder_forward(x2, h02, enc2, params)
    y2 = jax.block_until_ready(y2)
    y2_ref = reference_forward(x2, h02, enc2, params)
    np.testing.assert_allclose(np.asarray(y2), y2_ref, rtol=3e-2, atol=3e-2)

    print("KERNEL_OK")
</pallas_src>

<mosaic_0001>
module attributes {stable_mosaic.version = 11 : i64} {
  func.func @attn_decoder_kernel(%arg0: i32, %arg1: memref<2x256xbf16, #tpu.memory_space<vmem>>, %arg2: memref<2x32xf32, #tpu.memory_space<vmem>>, %arg3: memref<2x32xf32, #tpu.memory_space<vmem>>, %arg4: memref<2x8xf32, #tpu.memory_space<vmem>>, %arg5: memref<32x32xbf16, #tpu.memory_space<vmem>>, %arg6: memref<32x32xbf16, #tpu.memory_space<vmem>>, %arg7: memref<32x32xbf16, #tpu.memory_space<vmem>>, %arg8: memref<1x32xf32, #tpu.memory_space<vmem>>, %arg9: memref<32x32xbf16, #tpu.memory_space<vmem>>, %arg10: memref<1x32xf32, #tpu.memory_space<vmem>>, %arg11: memref<2x256xf32, #tpu.memory_space<vmem>>) attributes {dimension_semantics = [#tpu.dimension_semantics<parallel>], iteration_bounds = array<i64: 1>, scalar_prefetch = 0 : i64, scratch_operands = 0 : i64, tpu.core_type = #tpu.core_type<tc>, window_params = [{transform_indices = @transform_0, window_bounds = array<i64: 2, 256>}, {transform_indices = @transform_1, window_bounds = array<i64: 2, 32>}, {transform_indices = @transform_2, window_bounds = array<i64: 2, 32>}, {transform_indices = @transform_3, window_bounds = array<i64: 2, 8>}, {pipeline_mode = #tpu.pipeline_mode<synchronous>, transform_indices = @transform_4, window_bounds = array<i64: 32, 32>}, {pipeline_mode = #tpu.pipeline_mode<synchronous>, transform_indices = @transform_5, window_bounds = array<i64: 32, 32>}, {pipeline_mode = #tpu.pipeline_mode<synchronous>, transform_indices = @transform_6, window_bounds = array<i64: 32, 32>}, {pipeline_mode = #tpu.pipeline_mode<synchronous>, transform_indices = @transform_7, window_bounds = array<i64: 1, 32>}, {pipeline_mode = #tpu.pipeline_mode<synchronous>, transform_indices = @transform_8, window_bounds = array<i64: 32, 32>}, {pipeline_mode = #tpu.pipeline_mode<synchronous>, transform_indices = @transform_9, window_bounds = array<i64: 1, 32>}, {transform_indices = @transform_10, window_bounds = array<i64: 2, 256>}]} {
    %c0 = arith.constant 0 : index
    %c0_0 = arith.constant 0 : index
    %0 = vector.load %arg5[%c0, %c0_0] : memref<32x32xbf16, #tpu.memory_space<vmem>>, vector<32x32xbf16>
    %c0_1 = arith.constant 0 : index
    %c0_2 = arith.constant 0 : index
    %1 = vector.load %arg6[%c0_1, %c0_2] : memref<32x32xbf16, #tpu.memory_space<vmem>>, vector<32x32xbf16>
    %c0_3 = arith.constant 0 : index
    %c0_4 = arith.constant 0 : index
    %2 = vector.load %arg7[%c0_3, %c0_4] : memref<32x32xbf16, #tpu.memory_space<vmem>>, vector<32x32xbf16>
    %c0_5 = arith.constant 0 : index
    %c0_6 = arith.constant 0 : index
    %3 = vector.load %arg9[%c0_5, %c0_6] : memref<32x32xbf16, #tpu.memory_space<vmem>>, vector<32x32xbf16>
    %c0_7 = arith.constant 0 : index
    %c0_8 = arith.constant 0 : index
    %4 = vector.load %arg8[%c0_7, %c0_8] : memref<1x32xf32, #tpu.memory_space<vmem>>, vector<1x32xf32>
    %c0_9 = arith.constant 0 : index
    %c0_10 = arith.constant 0 : index
    %5 = vector.load %arg10[%c0_9, %c0_10] : memref<1x32xf32, #tpu.memory_space<vmem>>, vector<1x32xf32>
    %c0_11 = arith.constant 0 : index
    %c0_12 = arith.constant 0 : index
    %6 = vector.load %arg2[%c0_11, %c0_12] : memref<2x32xf32, #tpu.memory_space<vmem>>, vector<2x32xf32>
    %c0_13 = arith.constant 0 : index
    %c0_14 = arith.constant 0 : index
    %7 = vector.load %arg1[%c0_13, %c0_14] : memref<2x256xbf16, #tpu.memory_space<vmem>>, vector<2x32xbf16>
    %c0_15 = arith.constant 0 : index
    %c0_16 = arith.constant 0 : index
    %8 = vector.load %arg3[%c0_15, %c0_16] : memref<2x32xf32, #tpu.memory_space<vmem>>, vector<2x32xf32>
    %cst = arith.constant dense<0.000000e+00> : vector<2x32xf32>
    %9 = tpu.matmul %7, %0, %cst {dimension_numbers = #tpu.dot_dimension_numbers<[1], [0], [0], [1], [0, 0, 1, 1], [], []>} : vector<2x32xbf16>, vector<32x32xbf16>, vector<2x32xf32> -> vector<2x32xf32>
    %10 = arith.addf %9, %8 : vector<2x32xf32>
    %cst_17 = arith.constant 0.000000e+00 : f32
    %11 = vector.broadcast %cst_17 : f32 to vector<2x32xf32>
    %12 = arith.maximumf %10, %11 : vector<2x32xf32>
    %13 = arith.truncf %12 : vector<2x32xf32> to vector<2x32xbf16>
    %cst_18 = arith.constant dense<0.000000e+00> : vector<2x32xf32>
    %14 = tpu.matmul %13, %1, %cst_18 {dimension_numbers = #tpu.dot_dimension_numbers<[1], [0], [0], [1], [0, 0, 1, 1], [], []>} : vector<2x32xbf16>, vector<32x32xbf16>, vector<2x32xf32> -> vector<2x32xf32>
    %15 = vector.broadcast %4 : vector<1x32xf32> to vector<2x32xf32>
    %16 = arith.addf %14, %15 : vector<2x32xf32>
    %17 = arith.truncf %6 : vector<2x32xf32> to vector<2x32xbf16>
    %cst_19 = arith.constant dense<0.000000e+00> : vector<2x32xf32>
    %18 = tpu.matmul %17, %2, %cst_19 {dimension_numbers = #tpu.dot_dimension_numbers<[1], [0], [0], [1], [0, 0, 1, 1], [], []>} : vector<2x32xbf16>, vector<32x32xbf16>, vector<2x32xf32> -> vector<2x32xf32>
    %19 = arith.addf %16, %18 : vector<2x32xf32>
    %20 = math.tanh %19 : vector<2x32xf32>
    %21 = arith.truncf %20 : vector<2x32xf32> to vector<2x32xbf16>
    %cst_20 = arith.constant dense<0.000000e+00> : vector<2x32xf32>
    %22 = tpu.matmul %21, %3, %cst_20 {dimension_numbers = #tpu.dot_dimension_numbers<[1], [0], [0], [1], [0, 0, 1, 1], [], []>} : vector<2x32xbf16>, vector<32x32xbf16>, vector<2x32xf32> -> vector<2x32xf32>
    %23 = vector.broadcast %5 : vector<1x32xf32> to vector<2x32xf32>
    %24 = arith.addf %22, %23 : vector<2x32xf32>
    %c0_21 = arith.constant 0 : index
    %c0_22 = arith.constant 0 : index
    %25 = vector.load %arg4[%c0_21, %c0_22] : memref<2x8xf32, #tpu.memory_space<vmem>>, vector<2x1xf32>
    %cst_23 = arith.constant 0.000000e+00 : f32
    %26 = vector.broadcast %cst_23 : f32 to vector<2x1xf32>
    %27 = arith.cmpf ogt, %25, %26 : vector<2x1xf32>
    %cst_24 = arith.constant 0.000000e+00 : f32
    %28 = vector.shape_cast %27 : vector<2x1xi1> to vector<2x1xi1>
    %29 = vector.broadcast %28 : vector<2x1xi1> to vector<2x32xi1>
    %30 = vector.broadcast %cst_24 : f32 to vector<2x32xf32>
    %31 = arith.select %29, %24, %30 : vector<2x32xi1>, vector<2x32xf32>
    %c0_25 = arith.constant 0 : index
    %c0_26 = arith.constant 0 : index
    %32 = vector.load %arg11[%c0_25, %c0_26] : memref<2x256xf32, #tpu.memory_space<vmem>>, vector<2x32xf32>
    tpu.vector_store %arg11[%c0_25, %c0_26], %31 {strides = array<i32>} : memref<2x256xf32, #tpu.memory_space<vmem>>, vector<2x32xf32>,
    %c0_27 = arith.constant 0 : index
    %c32 = arith.constant 32 : index
    %33 = vector.load %arg1[%c0_27, %c32] : memref<2x256xbf16, #tpu.memory_space<vmem>>, vector<2x32xbf16>
    %c0_28 = arith.constant 0 : index
    %c0_29 = arith.constant 0 : index
    %34 = vector.load %arg3[%c0_28, %c0_29] : memref<2x32xf32, #tpu.memory_space<vmem>>, vector<2x32xf32>
    %cst_30 = arith.constant dense<0.000000e+00> : vector<2x32xf32>
    %35 = tpu.matmul %33, %0, %cst_30 {dimension_numbers = #tpu.dot_dimension_numbers<[1], [0], [0], [1], [0, 0, 1, 1], [], []>} : vector<2x32xbf16>, vector<32x32xbf16>, vector<2x32xf32> -> vector<2x32xf32>
    %36 = arith.addf %35, %34 : vector<2x32xf32>
    %cst_31 = arith.constant 0.000000e+00 : f32
    %37 = vector.broadcast %cst_31 : f32 to vector<2x32xf32>
    %38 = arith.maximumf %36, %37 : vector<2x32xf32>
    %39 = arith.truncf %38 : vector<2x32xf32> to vector<2x32xbf16>
    %cst_32 = arith.constant dense<0.000000e+00> : vector<2x32xf32>
    %40 = tpu.matmul %39, %1, %cst_32 {dimension_numbers = #tpu.dot_dimension_numbers<[1], [0], [0], [1], [0, 0, 1, 1], [], []>} : vector<2x32xbf16>, vector<32x32xbf16>, vector<2x32xf32> -> vector<2x32xf32>
    %41 = vector.broadcast %4 : vector<1x32xf32> to vector<2x32xf32>
    %42 = arith.addf %40, %41 : vector<2x32xf32>
    %43 = arith.truncf %20 : vector<2x32xf32> to vector<2x32xbf16>
    %cst_33 = arith.constant dense<0.000000e+00> : vector<2x32xf32>
    %44 = tpu.matmul %43, %2, %cst_33 {dimension_numbers = #tpu.dot_dimension_numbers<[1], [0], [0], [1], [0, 0, 1, 1], [], []>} : vector<2x32xbf16>, vector<32x32xbf16>, vector<2x32xf32> -> vector<2x32xf32>
    %45 = arith.addf %42, %44 : vector<2x32xf32>
    %46 = math.tanh %45 : vector<2x32xf32>
    %47 = arith.truncf %46 : vector<2x32xf32> to vector<2x32xbf16>
    %cst_34 = arith.constant dense<0.000000e+00> : vector<2x32xf32>
    %48 = tpu.matmul %47, %3, %cst_34 {dimension_numbers = #tpu.dot_dimension_numbers<[1], [0], [0], [1], [0, 0, 1, 1], [], []>} : vector<2x32xbf16>, vector<32x32xbf16>, vector<2x32xf32> -> vector<2x32xf32>
    %49 = vector.broadcast %5 : vector<1x32xf32> to vector<2x32xf32>
    %50 = arith.addf %48, %49 : vector<2x32xf32>
    %c0_35 = arith.constant 0 : index
    %c1 = arith.constant 1 : index
    %51 = vector.load %arg4[%c0_35, %c1] : memref<2x8xf32, #tpu.memory_space<vmem>>, vector<2x1xf32>
    %cst_36 = arith.constant 0.000000e+00 : f32
    %52 = vector.broadcast %cst_36 : f32 to vector<2x1xf32>
    %53 = arith.cmpf ogt, %51, %52 : vector<2x1xf32>
    %cst_37 = arith.constant 0.000000e+00 : f32
    %54 = vector.shape_cast %53 : vector<2x1xi1> to vector<2x1xi1>
    %55 = vector.broadcast %54 : vector<2x1xi1> to vector<2x32xi1>
    %56 = vector.broadcast %cst_37 : f32 to vector<2x32xf32>
    %57 = arith.select %55, %50, %56 : vector<2x32xi1>, vector<2x32xf32>
    %c0_38 = arith.constant 0 : index
    %c32_39 = arith.constant 32 : index
    %58 = vector.load %arg11[%c0_38, %c32_39] : memref<2x256xf32, #tpu.memory_space<vmem>>, vector<2x32xf32>
    tpu.vector_store %arg11[%c0_38, %c32_39], %57 {strides = array<i32>} : memref<2x256xf32, #tpu.memory_space<vmem>>, vector<2x32xf32>,
    %c0_40 = arith.constant 0 : index
    %c64 = arith.constant 64 : index
    %59 = vector.load %arg1[%c0_40, %c64] : memref<2x256xbf16, #tpu.memory_space<vmem>>, vector<2x32xbf16>
    %c0_41 = arith.constant 0 : index
    %c0_42 = arith.constant 0 : index
    %60 = vector.load %arg3[%c0_41, %c0_42] : memref<2x32xf32, #tpu.memory_space<vmem>>, vector<2x32xf32>
    %cst_43 = arith.constant dense<0.000000e+00> : vector<2x32xf32>
    %61 = tpu.matmul %59, %0, %cst_43 {dimension_numbers = #tpu.dot_dimension_numbers<[1], [0], [0], [1], [0, 0, 1, 1], [], []>} : vector<2x32xbf16>, vector<32x32xbf16>, vector<2x32xf32> -> vector<2x32xf32>
    %62 = arith.addf %61, %60 : vector<2x32xf32>
    %cst_44 = arith.constant 0.000000e+00 : f32
    %63 = vector.broadcast %cst_44 : f32 to vector<2x32xf32>
    %64 = arith.maximumf %62, %63 : vector<2x32xf32>
    %65 = arith.truncf %64 : vector<2x32xf32> to vector<2x32xbf16>
    %cst_45 = arith.constant dense<0.000000e+00> : vector<2x32xf32>
    %66 = tpu.matmul %65, %1, %cst_45 {dimension_numbers = #tpu.dot_dimension_numbers<[1], [0], [0], [1], [0, 0, 1, 1], [], []>} : vector<2x32xbf16>, vector<32x32xbf16>, vector<2x32xf32> -> vector<2x32xf32>
    %67 = vector.broadcast %4 : vector<1x32xf32> to vector<2x32xf32>
    %68 = arith.addf %66, %67 : vector<2x32xf32>
    %69 = arith.truncf %46 : vector<2x32xf32> to vector<2x32xbf16>
    %cst_46 = arith.constant dense<0.000000e+00> : vector<2x32xf32>
    %70 = tpu.matmul %69, %2, %cst_46 {dimension_numbers = #tpu.dot_dimension_numbers<[1], [0], [0], [1], [0, 0, 1, 1], [], []>} : vector<2x32xbf16>, vector<32x32xbf16>, vector<2x32xf32> -> vector<2x32xf32>
    %71 = arith.addf %68, %70 : vector<2x32xf32>
    %72 = math.tanh %71 : vector<2x32xf32>
    %73 = arith.truncf %72 : vector<2x32xf32> to vector<2x32xbf16>
    %cst_47 = arith.constant dense<0.000000e+00> : vector<2x32xf32>
    %74 = tpu.matmul %73, %3, %cst_47 {dimension_numbers = #tpu.dot_dimension_numbers<[1], [0], [0], [1], [0, 0, 1, 1], [], []>} : vector<2x32xbf16>, vector<32x32xbf16>, vector<2x32xf32> -> vector<2x32xf32>
    %75 = vector.broadcast %5 : vector<1x32xf32> to vector<2x32xf32>
    %76 = arith.addf %74, %75 : vector<2x32xf32>
    %c0_48 = arith.constant 0 : index
    %c2 = arith.constant 2 : index
    %77 = vector.load %arg4[%c0_48, %c2] : memref<2x8xf32, #tpu.memory_space<vmem>>, vector<2x1xf32>
    %cst_49 = arith.constant 0.000000e+00 : f32
    %78 = vector.broadcast %cst_49 : f32 to vector<2x1xf32>
    %79 = arith.cmpf ogt, %77, %78 : vector<2x1xf32>
    %cst_50 = arith.constant 0.000000e+00 : f32
    %80 = vector.shape_cast %79 : vector<2x1xi1> to vector<2x1xi1>
    %81 = vector.broadcast %80 : vector<2x1xi1> to vector<2x32xi1>
    %82 = vector.broadcast %cst_50 : f32 to vector<2x32xf32>
    %83 = arith.select %81, %76, %82 : vector<2x32xi1>, vector<2x32xf32>
    %c0_51 = arith.constant 0 : index
    %c64_52 = arith.constant 64 : index
    %84 = vector.load %arg11[%c0_51, %c64_52] : memref<2x256xf32, #tpu.memory_space<vmem>>, vector<2x32xf32>
    tpu.vector_store %arg11[%c0_51, %c64_52], %83 {strides = array<i32>} : memref<2x256xf32, #tpu.memory_space<vmem>>, vector<2x32xf32>,
    %c0_53 = arith.constant 0 : index
    %c96 = arith.constant 96 : index
    %85 = vector.load %arg1[%c0_53, %c96] : memref<2x256xbf16, #tpu.memory_space<vmem>>, vector<2x32xbf16>
    %c0_54 = arith.constant 0 : index
    %c0_55 = arith.constant 0 : index
    %86 = vector.load %arg3[%c0_54, %c0_55] : memref<2x32xf32, #tpu.memory_space<vmem>>, vector<2x32xf32>
    %cst_56 = arith.constant dense<0.000000e+00> : vector<2x32xf32>
    %87 = tpu.matmul %85, %0, %cst_56 {dimension_numbers = #tpu.dot_dimension_numbers<[1], [0], [0], [1], [0, 0, 1, 1], [], []>} : vector<2x32xbf16>, vector<32x32xbf16>, vector<2x32xf32> -> vector<2x32xf32>
    %88 = arith.addf %87, %86 : vector<2x32xf32>
    %cst_57 = arith.constant 0.000000e+00 : f32
    %89 = vector.broadcast %cst_57 : f32 to vector<2x32xf32>
    %90 = arith.maximumf %88, %89 : vector<2x32xf32>
    %91 = arith.truncf %90 : vector<2x32xf32> to vector<2x32xbf16>
    %cst_58 = arith.constant dense<0.000000e+00> : vector<2x32xf32>
    %92 = tpu.matmul %91, %1, %cst_58 {dimension_numbers = #tpu.dot_dimension_numbers<[1], [0], [0], [1], [0, 0, 1, 1], [], []>} : vector<2x32xbf16>, vector<32x32xbf16>, vector<2x32xf32> -> vector<2x32xf32>
    %93 = vector.broadcast %4 : vector<1x32xf32> to vector<2x32xf32>
    %94 = arith.addf %92, %93 : vector<2x32xf32>
    %95 = arith.truncf %72 : vector<2x32xf32> to vector<2x32xbf16>
    %cst_59 = arith.constant dense<0.000000e+00> : vector<2x32xf32>
    %96 = tpu.matmul %95, %2, %cst_59 {dimension_numbers = #tpu.dot_dimension_numbers<[1], [0], [0], [1], [0, 0, 1, 1], [], []>} : vector<2x32xbf16>, vector<32x32xbf16>, vector<2x32xf32> -> vector<2x32xf32>
    %97 = arith.addf %94, %96 : vector<2x32xf32>
    %98 = math.tanh %97 : vector<2x32xf32>
    %99 = arith.truncf %98 : vector<2x32xf32> to vector<2x32xbf16>
    %cst_60 = arith.constant dense<0.000000e+00> : vector<2x32xf32>
    %100 = tpu.matmul %99, %3, %cst_60 {dimension_numbers = #tpu.dot_dimension_numbers<[1], [0], [0], [1], [0, 0, 1, 1], [], []>} : vector<2x32xbf16>, vector<32x32xbf16>, vector<2x32xf32> -> vector<2x32xf32>
    %101 = vector.broadcast %5 : vector<1x32xf32> to vector<2x32xf32>
    %102 = arith.addf %100, %101 : vector<2x32xf32>
    %c0_61 = arith.constant 0 : index
    %c3 = arith.constant 3 : index
    %103 = vector.load %arg4[%c0_61, %c3] : memref<2x8xf32, #tpu.memory_space<vmem>>, vector<2x1xf32>
    %cst_62 = arith.constant 0.000000e+00 : f32
    %104 = vector.broadcast %cst_62 : f32 to vector<2x1xf32>
    %105 = arith.cmpf ogt, %103, %104 : vector<2x1xf32>
    %cst_63 = arith.constant 0.000000e+00 : f32
    %106 = vector.shape_cast %105 : vector<2x1xi1> to vector<2x1xi1>
    %107 = vector.broadcast %106 : vector<2x1xi1> to vector<2x32xi1>
    %108 = vector.broadcast %cst_63 : f32 to vector<2x32xf32>
    %109 = arith.select %107, %102, %108 : vector<2x32xi1>, vector<2x32xf32>
    %c0_64 = arith.constant 0 : index
    %c96_65 = arith.constant 96 : index
    %110 = vector.load %arg11[%c0_64, %c96_65] : memref<2x256xf32, #tpu.memory_space<vmem>>, vector<2x32xf32>
    tpu.vector_store %arg11[%c0_64, %c96_65], %109 {strides = array<i32>} : memref<2x256xf32, #tpu.memory_space<vmem>>, vector<2x32xf32>,
    %c0_66 = arith.constant 0 : index
    %c128 = arith.constant 128 : index
    %111 = vector.load %arg1[%c0_66, %c128] : memref<2x256xbf16, #tpu.memory_space<vmem>>, vector<2x32xbf16>
    %c0_67 = arith.constant 0 : index
    %c0_68 = arith.constant 0 : index
    %112 = vector.load %arg3[%c0_67, %c0_68] : memref<2x32xf32, #tpu.memory_space<vmem>>, vector<2x32xf32>
    %cst_69 = arith.constant dense<0.000000e+00> : vector<2x32xf32>
    %113 = tpu.matmul %111, %0, %cst_69 {dimension_numbers = #tpu.dot_dimension_numbers<[1], [0], [0], [1], [0, 0, 1, 1], [], []>} : vector<2x32xbf16>, vector<32x32xbf16>, vector<2x32xf32> -> vector<2x32xf32>
    %114 = arith.addf %113, %112 : vector<2x32xf32>
    %cst_70 = arith.constant 0.000000e+00 : f32
    %115 = vector.broadcast %cst_70 : f32 to vector<2x32xf32>
    %116 = arith.maximumf %114, %115 : vector<2x32xf32>
    %117 = arith.truncf %116 : vector<2x32xf32> to vector<2x32xbf16>
    %cst_71 = arith.constant dense<0.000000e+00> : vector<2x32xf32>
    %118 = tpu.matmul %117, %1, %cst_71 {dimension_numbers = #tpu.dot_dimension_numbers<[1], [0], [0], [1], [0, 0, 1, 1], [], []>} : vector<2x32xbf16>, vector<32x32xbf16>, vector<2x32xf32> -> vector<2x32xf32>
    %119 = vector.broadcast %4 : vector<1x32xf32> to vector<2x32xf32>
    %120 = arith.addf %118, %119 : vector<2x32xf32>
    %121 = arith.truncf %98 : vector<2x32xf32> to vector<2x32xbf16>
    %cst_72 = arith.constant dense<0.000000e+00> : vector<2x32xf32>
    %122 = tpu.matmul %121, %2, %cst_72 {dimension_numbers = #tpu.dot_dimension_numbers<[1], [0], [0], [1], [0, 0, 1, 1], [], []>} : vector<2x32xbf16>, vector<32x32xbf16>, vector<2x32xf32> -> vector<2x32xf32>
    %123 = arith.addf %120, %122 : vector<2x32xf32>
    %124 = math.tanh %123 : vector<2x32xf32>
    %125 = arith.truncf %124 : vector<2x32xf32> to vector<2x32xbf16>
    %cst_73 = arith.constant dense<0.000000e+00> : vector<2x32xf32>
    %126 = tpu.matmul %125, %3, %cst_73 {dimension_numbers = #tpu.dot_dimension_numbers<[1], [0], [0], [1], [0, 0, 1, 1], [], []>} : vector<2x32xbf16>, vector<32x32xbf16>, vector<2x32xf32> -> vector<2x32xf32>
    %127 = vector.broadcast %5 : vector<1x32xf32> to vector<2x32xf32>
    %128 = arith.addf %126, %127 : vector<2x32xf32>
    %c0_74 = arith.constant 0 : index
    %c4 = arith.constant 4 : index
    %129 = vector.load %arg4[%c0_74, %c4] : memref<2x8xf32, #tpu.memory_space<vmem>>, vector<2x1xf32>
    %cst_75 = arith.constant 0.000000e+00 : f32
    %130 = vector.broadcast %cst_75 : f32 to vector<2x1xf32>
    %131 = arith.cmpf ogt, %129, %130 : vector<2x1xf32>
    %cst_76 = arith.constant 0.000000e+00 : f32
    %132 = vector.shape_cast %131 : vector<2x1xi1> to vector<2x1xi1>
    %133 = vector.broadcast %132 : vector<2x1xi1> to vector<2x32xi1>
    %134 = vector.broadcast %cst_76 : f32 to vector<2x32xf32>
    %135 = arith.select %133, %128, %134 : vector<2x32xi1>, vector<2x32xf32>
    %c0_77 = arith.constant 0 : index
    %c128_78 = arith.constant 128 : index
    %136 = vector.load %arg11[%c0_77, %c128_78] : memref<2x256xf32, #tpu.memory_space<vmem>>, vector<2x32xf32>
    tpu.vector_store %arg11[%c0_77, %c128_78], %135 {strides = array<i32>} : memref<2x256xf32, #tpu.memory_space<vmem>>, vector<2x32xf32>,
    %c0_79 = arith.constant 0 : index
    %c160 = arith.constant 160 : index
    %137 = vector.load %arg1[%c0_79, %c160] : memref<2x256xbf16, #tpu.memory_space<vmem>>, vector<2x32xbf16>
    %c0_80 = arith.constant 0 : index
    %c0_81 = arith.constant 0 : index
    %138 = vector.load %arg3[%c0_80, %c0_81] : memref<2x32xf32, #tpu.memory_space<vmem>>, vector<2x32xf32>
    %cst_82 = arith.constant dense<0.000000e+00> : vector<2x32xf32>
    %139 = tpu.matmul %137, %0, %cst_82 {dimension_numbers = #tpu.dot_dimension_numbers<[1], [0], [0], [1], [0, 0, 1, 1], [], []>} : vector<2x32xbf16>, vector<32x32xbf16>, vector<2x32xf32> -> vector<2x32xf32>
    %140 = arith.addf %139, %138 : vector<2x32xf32>
    %cst_83 = arith.constant 0.000000e+00 : f32
    %141 = vector.broadcast %cst_83 : f32 to vector<2x32xf32>
    %142 = arith.maximumf %140, %141 : vector<2x32xf32>
    %143 = arith.truncf %142 : vector<2x32xf32> to vector<2x32xbf16>
    %cst_84 = arith.constant dense<0.000000e+00> : vector<2x32xf32>
    %144 = tpu.matmul %143, %1, %cst_84 {dimension_numbers = #tpu.dot_dimension_numbers<[1], [0], [0], [1], [0, 0, 1, 1], [], []>} : vector<2x32xbf16>, vector<32x32xbf16>, vector<2x32xf32> -> vector<2x32xf32>
    %145 = vector.broadcast %4 : vector<1x32xf32> to vector<2x32xf32>
    %146 = arith.addf %144, %145 : vector<2x32xf32>
    %147 = arith.truncf %124 : vector<2x32xf32> to vector<2x32xbf16>
    %cst_85 = arith.constant dense<0.000000e+00> : vector<2x32xf32>
    %148 = tpu.matmul %147, %2, %cst_85 {dimension_numbers = #tpu.dot_dimension_numbers<[1], [0], [0], [1], [0, 0, 1, 1], [], []>} : vector<2x32xbf16>, vector<32x32xbf16>, vector<2x32xf32> -> vector<2x32xf32>
    %149 = arith.addf %146, %148 : vector<2x32xf32>
    %150 = math.tanh %149 : vector<2x32xf32>
    %151 = arith.truncf %150 : vector<2x32xf32> to vector<2x32xbf16>
    %cst_86 = arith.constant dense<0.000000e+00> : vector<2x32xf32>
    %152 = tpu.matmul %151, %3, %cst_86 {dimension_numbers = #tpu.dot_dimension_numbers<[1], [0], [0], [1], [0, 0, 1, 1], [], []>} : vector<2x32xbf16>, vector<32x32xbf16>, vector<2x32xf32> -> vector<2x32xf32>
    %153 = vector.broadcast %5 : vector<1x32xf32> to vector<2x32xf32>
    %154 = arith.addf %152, %153 : vector<2x32xf32>
    %c0_87 = arith.constant 0 : index
    %c5 = arith.constant 5 : index
    %155 = vector.load %arg4[%c0_87, %c5] : memref<2x8xf32, #tpu.memory_space<vmem>>, vector<2x1xf32>
    %cst_88 = arith.constant 0.000000e+00 : f32
    %156 = vector.broadcast %cst_88 : f32 to vector<2x1xf32>
    %157 = arith.cmpf ogt, %155, %156 : vector<2x1xf32>
    %cst_89 = arith.constant 0.000000e+00 : f32
    %158 = vector.shape_cast %157 : vector<2x1xi1> to vector<2x1xi1>
    %159 = vector.broadcast %158 : vector<2x1xi1> to vector<2x32xi1>
    %160 = vector.broadcast %cst_89 : f32 to vector<2x32xf32>
    %161 = arith.select %159, %154, %160 : vector<2x32xi1>, vector<2x32xf32>
    %c0_90 = arith.constant 0 : index
    %c160_91 = arith.constant 160 : index
    %162 = vector.load %arg11[%c0_90, %c160_91] : memref<2x256xf32, #tpu.memory_space<vmem>>, vector<2x32xf32>
    tpu.vector_store %arg11[%c0_90, %c160_91], %161 {strides = array<i32>} : memref<2x256xf32, #tpu.memory_space<vmem>>, vector<2x32xf32>,
    %c0_92 = arith.constant 0 : index
    %c192 = arith.constant 192 : index
    %163 = vector.load %arg1[%c0_92, %c192] : memref<2x256xbf16, #tpu.memory_space<vmem>>, vector<2x32xbf16>
    %c0_93 = arith.constant 0 : index
    %c0_94 = arith.constant 0 : index
    %164 = vector.load %arg3[%c0_93, %c0_94] : memref<2x32xf32, #tpu.memory_space<vmem>>, vector<2x32xf32>
    %cst_95 = arith.constant dense<0.000000e+00> : vector<2x32xf32>
    %165 = tpu.matmul %163, %0, %cst_95 {dimension_numbers = #tpu.dot_dimension_numbers<[1], [0], [0], [1], [0, 0, 1, 1], [], []>} : vector<2x32xbf16>, vector<32x32xbf16>, vector<2x32xf32> -> vector<2x32xf32>
    %166 = arith.addf %165, %164 : vector<2x32xf32>
    %cst_96 = arith.constant 0.000000e+00 : f32
    %167 = vector.broadcast %cst_96 : f32 to vector<2x32xf32>
    %168 = arith.maximumf %166, %167 : vector<2x32xf32>
    %169 = arith.truncf %168 : vector<2x32xf32> to vector<2x32xbf16>
    %cst_97 = arith.constant dense<0.000000e+00> : vector<2x32xf32>
    %170 = tpu.matmul %169, %1, %cst_97 {dimension_numbers = #tpu.dot_dimension_numbers<[1], [0], [0], [1], [0, 0, 1, 1], [], []>} : vector<2x32xbf16>, vector<32x32xbf16>, vector<2x32xf32> -> vector<2x32xf32>
    %171 = vector.broadcast %4 : vector<1x32xf32> to vector<2x32xf32>
    %172 = arith.addf %170, %171 : vector<2x32xf32>
    %173 = arith.truncf %150 : vector<2x32xf32> to vector<2x32xbf16>
    %cst_98 = arith.constant dense<0.000000e+00> : vector<2x32xf32>
    %174 = tpu.matmul %173, %2, %cst_98 {dimension_numbers = #tpu.dot_dimension_numbers<[1], [0], [0], [1], [0, 0, 1, 1], [], []>} : vector<2x32xbf16>, vector<32x32xbf16>, vector<2x32xf32> -> vector<2x32xf32>
    %175 = arith.addf %172, %174 : vector<2x32xf32>
    %176 = math.tanh %175 : vector<2x32xf32>
    %177 = arith.truncf %176 : vector<2x32xf32> to vector<2x32xbf16>
    %cst_99 = arith.constant dense<0.000000e+00> : vector<2x32xf32>
    %178 = tpu.matmul %177, %3, %cst_99 {dimension_numbers = #tpu.dot_dimension_numbers<[1], [0], [0], [1], [0, 0, 1, 1], [], []>} : vector<2x32xbf16>, vector<32x32xbf16>, vector<2x32xf32> -> vector<2x32xf32>
    %179 = vector.broadcast %5 : vector<1x32xf32> to vector<2x32xf32>
    %180 = arith.addf %178, %179 : vector<2x32xf32>
    %c0_100 = arith.constant 0 : index
    %c6 = arith.constant 6 : index
    %181 = vector.load %arg4[%c0_100, %c6] : memref<2x8xf32, #tpu.memory_space<vmem>>, vector<2x1xf32>
    %cst_101 = arith.constant 0.000000e+00 : f32
    %182 = vector.broadcast %cst_101 : f32 to vector<2x1xf32>
    %183 = arith.cmpf ogt, %181, %182 : vector<2x1xf32>
    %cst_102 = arith.constant 0.000000e+00 : f32
    %184 = vector.shape_cast %183 : vector<2x1xi1> to vector<2x1xi1>
    %185 = vector.broadcast %184 : vector<2x1xi1> to vector<2x32xi1>
    %186 = vector.broadcast %cst_102 : f32 to vector<2x32xf32>
    %187 = arith.select %185, %180, %186 : vector<2x32xi1>, vector<2x32xf32>
    %c0_103 = arith.constant 0 : index
    %c192_104 = arith.constant 192 : index
    %188 = vector.load %arg11[%c0_103, %c192_104] : memref<2x256xf32, #tpu.memory_space<vmem>>, vector<2x32xf32>
    tpu.vector_store %arg11[%c0_103, %c192_104], %187 {strides = array<i32>} : memref<2x256xf32, #tpu.memory_space<vmem>>, vector<2x32xf32>,
    %c0_105 = arith.constant 0 : index
    %c224 = arith.constant 224 : index
    %189 = vector.load %arg1[%c0_105, %c224] : memref<2x256xbf16, #tpu.memory_space<vmem>>, vector<2x32xbf16>
    %c0_106 = arith.constant 0 : index
    %c0_107 = arith.constant 0 : index
    %190 = vector.load %arg3[%c0_106, %c0_107] : memref<2x32xf32, #tpu.memory_space<vmem>>, vector<2x32xf32>
    %cst_108 = arith.constant dense<0.000000e+00> : vector<2x32xf32>
    %191 = tpu.matmul %189, %0, %cst_108 {dimension_numbers = #tpu.dot_dimension_numbers<[1], [0], [0], [1], [0, 0, 1, 1], [], []>} : vector<2x32xbf16>, vector<32x32xbf16>, vector<2x32xf32> -> vector<2x32xf32>
    %192 = arith.addf %191, %190 : vector<2x32xf32>
    %cst_109 = arith.constant 0.000000e+00 : f32
    %193 = vector.broadcast %cst_109 : f32 to vector<2x32xf32>
    %194 = arith.maximumf %192, %193 : vector<2x32xf32>
    %195 = arith.truncf %194 : vector<2x32xf32> to vector<2x32xbf16>
    %cst_110 = arith.constant dense<0.000000e+00> : vector<2x32xf32>
    %196 = tpu.matmul %195, %1, %cst_110 {dimension_numbers = #tpu.dot_dimension_numbers<[1], [0], [0], [1], [0, 0, 1, 1], [], []>} : vector<2x32xbf16>, vector<32x32xbf16>, vector<2x32xf32> -> vector<2x32xf32>
    %197 = vector.broadcast %4 : vector<1x32xf32> to vector<2x32xf32>
    %198 = arith.addf %196, %197 : vector<2x32xf32>
    %199 = arith.truncf %176 : vector<2x32xf32> to vector<2x32xbf16>
    %cst_111 = arith.constant dense<0.000000e+00> : vector<2x32xf32>
    %200 = tpu.matmul %199, %2, %cst_111 {dimension_numbers = #tpu.dot_dimension_numbers<[1], [0], [0], [1], [0, 0, 1, 1], [], []>} : vector<2x32xbf16>, vector<32x32xbf16>, vector<2x32xf32> -> vector<2x32xf32>
    %201 = arith.addf %198, %200 : vector<2x32xf32>
    %202 = math.tanh %201 : vector<2x32xf32>
    %203 = arith.truncf %202 : vector<2x32xf32> to vector<2x32xbf16>
    %cst_112 = arith.constant dense<0.000000e+00> : vector<2x32xf32>
    %204 = tpu.matmul %203, %3, %cst_112 {dimension_numbers = #tpu.dot_dimension_numbers<[1], [0], [0], [1], [0, 0, 1, 1], [], []>} : vector<2x32xbf16>, vector<32x32xbf16>, vector<2x32xf32> -> vector<2x32xf32>
    %205 = vector.broadcast %5 : vector<1x32xf32> to vector<2x32xf32>
    %206 = arith.addf %204, %205 : vector<2x32xf32>
    %c0_113 = arith.constant 0 : index
    %c7 = arith.constant 7 : index
    %207 = vector.load %arg4[%c0_113, %c7] : memref<2x8xf32, #tpu.memory_space<vmem>>, vector<2x1xf32>
    %cst_114 = arith.constant 0.000000e+00 : f32
    %208 = vector.broadcast %cst_114 : f32 to vector<2x1xf32>
    %209 = arith.cmpf ogt, %207, %208 : vector<2x1xf32>
    %cst_115 = arith.constant 0.000000e+00 : f32
    %210 = vector.shape_cast %209 : vector<2x1xi1> to vector<2x1xi1>
    %211 = vector.broadcast %210 : vector<2x1xi1> to vector<2x32xi1>
    %212 = vector.broadcast %cst_115 : f32 to vector<2x32xf32>
    %213 = arith.select %211, %206, %212 : vector<2x32xi1>, vector<2x32xf32>
    %c0_116 = arith.constant 0 : index
    %c224_117 = arith.constant 224 : index
    %214 = vector.load %arg11[%c0_116, %c224_117] : memref<2x256xf32, #tpu.memory_space<vmem>>, vector<2x32xf32>
    tpu.vector_store %arg11[%c0_116, %c224_117], %213 {strides = array<i32>} : memref<2x256xf32, #tpu.memory_space<vmem>>, vector<2x32xf32>,
    return
  }
  func.func @transform_0(%arg0: i32) -> (i32, i32) {
    %c0_i32 = arith.constant 0 : i32
    %c0_i32_0 = arith.constant 0 : i32
    return %arg0, %c0_i32 : i32, i32
  }
  func.func @transform_1(%arg0: i32) -> (i32, i32) {
    %c0_i32 = arith.constant 0 : i32
    %c0_i32_0 = arith.constant 0 : i32
    return %arg0, %c0_i32 : i32, i32
  }
  func.func @transform_2(%arg0: i32) -> (i32, i32) {
    %c0_i32 = arith.constant 0 : i32
    %c0_i32_0 = arith.constant 0 : i32
    return %arg0, %c0_i32 : i32, i32
  }
  func.func @transform_3(%arg0: i32) -> (i32, i32) {
    %c0_i32 = arith.constant 0 : i32
    %c0_i32_0 = arith.constant 0 : i32
    return %arg0, %c0_i32 : i32, i32
  }
  func.func @transform_4(%arg0: i32) -> (i32, i32) {
    %c0_i32 = arith.constant 0 : i32
    %c0_i32_0 = arith.constant 0 : i32
    %c0_i32_1 = arith.constant 0 : i32
    return %c0_i32, %c0_i32_0 : i32, i32
  }
  func.func @transform_5(%arg0: i32) -> (i32, i32) {
    %c0_i32 = arith.constant 0 : i32
    %c0_i32_0 = arith.constant 0 : i32
    %c0_i32_1 = arith.constant 0 : i32
    return %c0_i32, %c0_i32_0 : i32, i32
  }
  func.func @transform_6(%arg0: i32) -> (i32, i32) {
    %c0_i32 = arith.constant 0 : i32
    %c0_i32_0 = arith.constant 0 : i32
    %c0_i32_1 = arith.constant 0 : i32
    return %c0_i32, %c0_i32_0 : i32, i32
  }
  func.func @transform_7(%arg0: i32) -> (i32, i32) {
    %c0_i32 = arith.constant 0 : i32
    %c0_i32_0 = arith.constant 0 : i32
    %c0_i32_1 = arith.constant 0 : i32
    return %c0_i32, %c0_i32_0 : i32, i32
  }
  func.func @transform_8(%arg0: i32) -> (i32, i32) {
    %c0_i32 = arith.constant 0 : i32
    %c0_i32_0 = arith.constant 0 : i32
    %c0_i32_1 = arith.constant 0 : i32
    return %c0_i32, %c0_i32_0 : i32, i32
  }
  func.func @transform_9(%arg0: i32) -> (i32, i32) {
    %c0_i32 = arith.constant 0 : i32
    %c0_i32_0 = arith.constant 0 : i32
    %c0_i32_1 = arith.constant 0 : i32
    return %c0_i32, %c0_i32_0 : i32, i32
  }
  func.func @transform_10(%arg0: i32) -> (i32, i32) {
    %c0_i32 = arith.constant 0 : i32
    %c0_i32_0 = arith.constant 0 : i32
    return %arg0, %c0_i32 : i32, i32
  }
}

</mosaic_0001>

<bundles_post_ra>
// kernel: tpu_custom_call.1
= control target key start
LH: loop header
LB: loop body
LE: loop exit
PB: predicated region body
PF: predicated region fallthrough
CT: control target
= control target key end

     0   :  { %15 = vsyncpa [#allocation3], 0  ;;  %s2974_s0 = inlined_call_operand.hbm [shape: bf16[2,256], index: 0, kind: input, shape index: {}]   ;;  %s2975_s1 = inlined_call_operand.hbm [shape: f32[2,32], index: 1, kind: input, shape index: {}]   ;;  %s2976_s2 = inlined_call_operand.vmem [shape: f32[2,32], index: 2, kind: input, shape index: {}]   ;;  %s2977_s3 = inlined_call_operand.vmem [shape: f32[2,8], index: 3, kind: input, shape index: {}]   ;;  %s2978_s4 = inlined_call_operand.hbm [shape: bf16[32,32], index: 4, kind: input, shape index: {}]   ;;  %s2979_s5 = inlined_call_operand.hbm [shape: bf16[32,32], index: 5, kind: input, shape index: {}]   ;;  %s2980_s6 = inlined_call_operand.hbm [shape: bf16[32,32], index: 6, kind: input, shape index: {}]   ;;  %s2981_s7 = inlined_call_operand.vmem [shape: f32[1,32], index: 7, kind: input, shape index: {}]   ;;  %s2982_s8 = inlined_call_operand.hbm [shape: bf16[32,32], index: 8, kind: input, shape index: {}]   ;;  %s2983_s9 = inlined_call_operand.vmem [shape: f32[1,32], index: 9, kind: input, shape index: {}]   ;;  %s2984_s10 = inlined_call_operand.hbm [shape: f32[2,256], index: 10, kind: output, shape index: {}]  }
   0x1   :  { %16 = vsyncpa [#allocation6], 0 }
   0x2   :  { %17 = vsyncpa [#allocation9], 0 }
   0x3   :  { %18 = vsyncpa [#allocation12], 0 }
   0x4   :  { %19 = vsyncpa [#allocation4], 0  ;;  %s2475_s13 = smov [#allocation5]  }
   0x5   :  { %s36_s14 = sshll.u32 %s2475_s13, 4  ;;  %s37_s14 = int_to_ptr.vmem [resolvable:$true] %s36_s14 }
   0x6   :  { %s2333_s15 = scalar_lea.vmem %s37_s14, 32  ;;  %p2338_p1 = scmp.lt.s32.totalorder %s37_s14, %s37_s14 }
   0x7   :  { %p2334_p0 = scmp.ne.s32.totalorder %s37_s14, %s2333_s15  ;;  %p2339_p2 = scmp.lt.s32.totalorder %s2333_s15, %s2333_s15 }
   0x9   :  { %p2340_p3 = por %p2339_p2, %p2338_p1 }
   0xb   :  { %p2341_p4 = pnand %p2340_p3, %p2334_p0 }
   0xd   :  { %2344 = shalt.err (!%p2341_p4)
}
   0xe   :  { %39 = dma.hbm_to_vmem [thread:$0]  %s2975_s1, 32, %s37_s14, [#allocation6]  }
   0xf   :  { %s2476_s18 = smov [#allocation8]   ;;  %s2477_s20 = smov [#allocation2]  }
  0x10   :  { %s61_s19 = sshll.u32 %s2476_s18, 4  ;;  %s26_s21 = sshll.u32 %s2477_s20, 4  ;;  %s62_s19 = int_to_ptr.vmem [resolvable:$true] %s61_s19  ;;  %s27_s21 = int_to_ptr.vmem [resolvable:$true] %s26_s21 }
  0x11   :  { %s2353_s22 = scalar_lea.vmem %s62_s19, 256  ;;  %p2358_p6 = scmp.lt.s32.totalorder %s62_s19, %s62_s19 }
  0x12   :  { %p2354_p5 = scmp.ne.s32.totalorder %s62_s19, %s2353_s22  ;;  %p2359_p7 = scmp.lt.s32.totalorder %s2353_s22, %s2353_s22 }
  0x14   :  { %p2360_p8 = por %p2359_p7, %p2358_p6 }
  0x16   :  { %p2361_p9 = pnand %p2360_p8, %p2354_p5 }
  0x18   :  { %2364 = shalt.err (!%p2361_p9)
}
  0x19   :  { %s2478_s23 = smov 64   ;;  %s2479_s24 = smov 4  }
  0x1a   :  { %67 = dma.hbm_to_vmem [thread:$0]  %s2979_s5, 256, %s62_s19, [#allocation9], %s2478_s23, %s2478_s23, %s2479_s24  }
  0x1b   :  { %s2373_s1 = scalar_lea.vmem %s27_s21, 32  ;;  %p2378_p11 = scmp.lt.s32.totalorder %s27_s21, %s27_s21 }
  0x1c   :  { %p2374_p10 = scmp.ne.s32.totalorder %s27_s21, %s2373_s1  ;;  %p2379_p12 = scmp.lt.s32.totalorder %s2373_s1, %s2373_s1 }
  0x1e   :  { %p2380_p13 = por %p2379_p12, %p2378_p11 }
  0x20   :  { %p2381_p0 = pnand %p2380_p13, %p2374_p10 }
  0x22   :  { %2384 = shalt.err (!%p2381_p0)
}
  0x23   :  { %29 = dma.hbm_to_vmem [thread:$0]  %s2974_s0, 32, %s27_s21, [#allocation3]  }
  0x24   :  { %s2480_s29 = smov [#allocation7]   ;;  %s2481_s11 = smov [#allocation10]  }
  0x25   :  { %s49_s30 = sshll.u32 %s2480_s29, 4  ;;  %s73_s12 = sshll.u32 %s2481_s11, 4  ;;  %s50_s30 = int_to_ptr.vmem [resolvable:$true] %s49_s30  ;;  %s74_s12 = int_to_ptr.vmem [resolvable:$true] %s73_s12 }
  0x26   :  { %s2393_s13 = scalar_lea.vmem %s50_s30, 256  ;;  %p2398_p2 = scmp.lt.s32.totalorder %s50_s30, %s50_s30 }
  0x27   :  { %p2394_p1 = scmp.ne.s32.totalorder %s50_s30, %s2393_s13  ;;  %p2399_p3 = scmp.lt.s32.totalorder %s2393_s13, %s2393_s13 }
  0x29   :  { %p2400_p4 = por %p2399_p3, %p2398_p2 }
  0x2b   :  { %p2401_p5 = pnand %p2400_p4, %p2394_p1 }
  0x2d   :  { %2404 = shalt.err (!%p2401_p5)
}
  0x2e   :  { %55 = dma.hbm_to_vmem [thread:$0]  %s2978_s4, 256, %s50_s30, [#allocation6], %s2478_s23, %s2478_s23, %s2479_s24  }
  0x2f   :  { %s2413_s0 = scalar_lea.vmem %s74_s12, 256  ;;  %p2418_p7 = scmp.lt.s32.totalorder %s74_s12, %s74_s12 }
  0x30   :  { %p2414_p6 = scmp.ne.s32.totalorder %s74_s12, %s2413_s0  ;;  %p2419_p8 = scmp.lt.s32.totalorder %s2413_s0, %s2413_s0 }
  0x32   :  { %p2420_p9 = por %p2419_p8, %p2418_p7 }
  0x34   :  { %p2421_p10 = pnand %p2420_p9, %p2414_p6 }
  0x36   :  { %2424 = shalt.err (!%p2421_p10)
}
  0x37   :  { %79 = dma.hbm_to_vmem [thread:$0]  %s2980_s6, 256, %s74_s12, [#allocation9], %s2478_s23, %s2478_s23, %s2479_s24  }
  0x38   :  { %s2482_s17 = smov [#allocation11]  }
  0x39   :  { %s87_s18 = sshll.u32 %s2482_s17, 4  ;;  %s88_s18 = int_to_ptr.vmem [resolvable:$true] %s87_s18 }
  0x3a   :  { %s2433_s19 = scalar_lea.vmem %s88_s18, 256  ;;  %p2438_p12 = scmp.lt.s32.totalorder %s88_s18, %s88_s18 }
  0x3b   :  { %p2434_p11 = scmp.ne.s32.totalorder %s88_s18, %s2433_s19  ;;  %p2439_p13 = scmp.lt.s32.totalorder %s2433_s19, %s2433_s19 }
  0x3d   :  { %p2440_p0 = por %p2439_p13, %p2438_p12 }
  0x3f   :  { %p2441_p1 = pnand %p2440_p0, %p2434_p11 }
  0x41   :  { %2444 = shalt.err (!%p2441_p1)
}
  0x42   :  { %93 = dma.hbm_to_vmem [thread:$0]  %s2982_s8, 256, %s88_s18, [#allocation12], %s2478_s23, %s2478_s23, %s2479_s24  }
  0x43   :  { %2465 = dma.done.wait [#allocation3], 32  }
  0x44   :  { %2466 = vsyncadd [#allocation3], 4294967264 }
  0x45   :  { %2467 = dma.done.wait [#allocation6], 288  }
  0x46   :  { %2468 = vsyncadd [#allocation6], 4294967008 }
  0x47   :  { %2469 = dma.done.wait [#allocation9], 512  }
  0x48   :  { %2470 = vsyncadd [#allocation9], 4294966784 }
  0x49   :  { %2471 = dma.done.wait [#allocation12], 256  }
  0x4a   :  { %2472 = vsyncadd [#allocation12], 4294967040  ;;  %v398_v0 = vlaneseq  ;;  %v2483_v1 = vmov 0.0   ;;  %vm2484_vm0 = vmmov 0   ;;  %v2485_v2 = vmov 1966171168  }
  0x4b   :  { %2013 = vmatprep.subr.bf16.mxu0 %v2483_v1  ;;  %2017 = vmatprep.mubr.msk.bf16.mxu0 %vm2484_vm0, %v2483_v1  ;;  %v396_v3 = vunpack.c.l.s4 %v2485_v2  ;;  %v2594_v7 = vld [vmem:[#allocation7 + $0x8] sm:$0xff]   ;;  %v2597_v8 = vld [vmem:[#allocation7] sm:$0xff]   ;;  %v1883_v9 = vld.sshfl [vmem:[#allocation2] sm:$0x1 pattern:$0x75316420] }
  0x4c   :  { %v2586_v4 = vshrl.u32 %v398_v0, 7  ;;  %2021 = vmatprep.subr.bf16.mxu1 %v2483_v1  ;;  %2025 = vmatprep.mubr.msk.bf16.mxu1 %vm2484_vm0, %v2483_v1  ;;  %v134_v11 = vld [vmem:[#allocation2] sm:$0x1]  ;;  %vm148_vm1 = vcmask 261120   ;;  %v2603_v12 = vld [vmem:[#allocation10 + $0x8] sm:$0xff]   ;;  %s2486_s6 = smov 96  }
  0x4d   :  { %v397_v5 = vunpack.c.0.s8 %v396_v3  ;;  %2014 = vmatpush3.bf16.msra.mxu0 %v2594_v7  ;;  %v2616_v13 = vld [vmem:[#allocation8 + $0x8] sm:$0xff]   ;;  %v2618_v14 = vld [vmem:[#allocation10] sm:$0xff]   ;;  %v2624_v17 = vld [vmem:[#allocation8] sm:$0xff]   ;;  %v2487_v35 = vmov 1   ;;  %s2488_s25 = smov 32   ;;  %v2489_v38 = vmov 0  }
  0x4e   :  { %2015 = vmatprep.subr.bf16.mxu0 %v2483_v1  ;;  %2022 = vmatpush3.bf16.msra.mxu1 %v2616_v13  ;;  %v133_v15 = vld [vmem:[#allocation5] sm:$0x3]  ;;  %v135_v19 = vld [vmem:[%s2976_s2] sm:$0x3]  ;;  %v2652_v32 = vld [vmem:[#allocation11] sm:$0xff]   ;;  %v2490_v43 = vmov 6  }
  0x4f   :  { %v2592_v6 = vsub.s32 %v397_v5, %v2586_v4  ;;  %2023 = vmatprep.subr.bf16.mxu1 %v2483_v1  ;;  %v255_v16 = vpack.c.bf16 %v133_v15, %v133_v15  ;;  %v2648_v31 = vld [vmem:[#allocation11 + $0x8] sm:$0xff]   ;;  %2292 = vset.pattern.permute.xlu0 %v2487_v35  ;;  %v2491_v0 = vmov 5   ;;  %v2492_v3 = vmov 7  }
  0x50   :  { %v1907_v33 = vld.sshfl [vmem:[#allocation2 + $0x1] sm:$0x1 pattern:$0x75316420]  ;;  %v2678_v48 = vld [vmem:[%s2981_s7] ss:$0 sm:$0xff]  ;;  %2293 = vset.pattern.permute.xlu1 %v2491_v0 }
  0x51   :  { %v2601_v10 = vrot.slane %v1883_v9, %v2592_v6  ;;  %2016 = vmatpush3.bf16.msra.mxu0 %v2597_v8  ;;  %v1441_v34 = vrot.slane %v1907_v33, %v2592_v6  ;;  %v578_v36 = vld [vmem:[%s2977_s3] sm:$0x3]  ;;  %v2493_v9 = vmov 2   ;;  %v2494_v15 = vmov 3  }
  0x52   :  { %2029 = vmatprep.subr.bf16.mxu0 %v2483_v1  ;;  %2024 = vmatpush3.bf16.msra.mxu1 %v2624_v17  ;;  %vm579_vm2 = vcmp.gt.f32.partialorder %v578_v36, 0.0  ;;  %v1618_v37 = vld [vmem:[%s2977_s3] sm:$0x3]  ;;  %vm383_vm11 = vcmask 254976   ;;  %vm597_vm13 = vcmask 517376   ;;  %vm811_vm15 = vcmask 779776  }
  0x53   :  { %402 = vrot.lane.b32.xlu0 %v2601_v10, %s2486_s6  ;;  %2037 = vmatprep.subr.bf16.mxu1 %v2483_v1  ;;  %v580_v39 = vsel %vm579_vm2, 1, %v2489_v38  ;;  %vm1619_vm3 = vcmp.gt.f32.partialorder %v1618_v37, 0.0  ;;  %v375_v40 = vld [vmem:[%s2977_s3] sm:$0x3] }
  0x54   :  { %2018 = vmatmul.mubr.msk.bf16.vlgmr.msra.gmra.mxu0 %vm148_vm1, %v134_v11  ;;  %830 = vrot.lane.b32.xlu1 %v2601_v10, %s2488_s25  ;;  %v1620_v41 = vsel %vm1619_vm3, 1, %v2489_v38  ;;  %vm376_vm4 = vcmp.gt.f32.partialorder %v375_v40, 0.0  ;;  %v386_v55 = vld [vmem:[%s2976_s2] sm:$0x3]  ;;  %vm1025_vm3 = vcmask 1042176  }
  0x55   :  { %2030 = vmatpush3.bf16.msra.mxu0 %v2603_v12  ;;  %2033 = vmatprep.mubr.msk.bf16.mxu0 %vm2484_vm0, %v2483_v1  ;;  %v377_v46 = vsel %vm376_vm4, 1, %v2489_v38  ;;  %v1405_v62 = vld [vmem:[%s2977_s3] sm:$0x3] }
  0x56   :  { %2031 = vmatprep.subr.bf16.mxu0 %v2483_v1  ;;  %v792_v63 = vld [vmem:[%s2977_s3] sm:$0x3]  ;;  %vm1406_vm5 = vcmp.gt.f32.partialorder %v1405_v62, 0.0 }
  0x57   :  { %616 = vrot.lane.b32.xlu0 %v2601_v10, %s2478_s23  ;;  %v1407_v2 = vsel %vm1406_vm5, 1, %v2489_v38  ;;  %vm793_vm6 = vcmp.gt.f32.partialorder %v792_v63, 0.0  ;;  %v1006_v5 = vld [vmem:[%s2977_s3] sm:$0x3] }
  0x58   :  { %1229 = vrot.lane.b32.xlu1 %v1441_v34, %s2486_s6  ;;  %v794_v6 = vsel %vm793_vm6, 1, %v2489_v38  ;;  %vm1007_vm7 = vcmp.gt.f32.partialorder %v1006_v5, 0.0  ;;  %v1831_v10 = vld [vmem:[%s2977_s3] sm:$0x3] }
  0x59   :  { %2032 = vmatpush3.bf16.msra.mxu0 %v2618_v14  ;;  %v1008_v11 = vsel %vm1007_vm7, 1, %v2489_v38  ;;  %vm1832_vm8 = vcmp.gt.f32.partialorder %v1831_v10, 0.0 }
  0x5a   :  { %2045 = vmatprep.subr.bf16.mxu0 %v2483_v1 }
  0x5b   :  { %1442 = vrot.lane.b32.xlu0 %v1441_v34, %s2478_s23 }
  0x5c   :  { %2034 = vmatmul.mubr.msk.bf16.vlgmr.msra.gmra.mxu0 %vm148_vm1, %v255_v16  ;;  %1655 = vrot.lane.b32.xlu1 %v1441_v34, %s2488_s25  ;;  %v1203_v16 = vld [vmem:[%s2977_s3] sm:$0x3] }
  0x5d   :  { %2046 = vmatpush3.bf16.msra.mxu0 %v2594_v7  ;;  %2049 = vmatprep.mubr.msk.bf16.mxu0 %vm2484_vm0, %v2483_v1  ;;  %vm1204_vm9 = vcmp.gt.f32.partialorder %v1203_v16, 0.0 }
  0x5e   :  { %2047 = vmatprep.subr.bf16.mxu0 %v2483_v1 }
  0x5f   :  { %582 = vperm.xlu0 %2292, %v580_v39  }
  0x60   :  { %1409 = vperm.xlu1 %2293, %v1407_v2  }
  0x61   :  { %2048 = vmatpush3.bf16.msra.mxu0 %v2597_v8 }
  0x62   :  { %2061 = vmatprep.subr.bf16.mxu0 %v2483_v1 }
  0x63   :  { %2295 = vset.pattern.permute.xlu0 %v2490_v43 }
  0x64   :  { %1622 = vperm.xlu0 %2295, %v1620_v41   ;;  %2294 = vset.pattern.permute.xlu1 %v2493_v9 }
  0x65   :  { %796 = vperm.xlu1 %2294, %v794_v6  }
  0x68   :  { %2298 = vset.pattern.permute.xlu0 %v2489_v38 }
  0x69   :  { %379 = vperm.xlu0 %2298, %v377_v46   ;;  %2296 = vset.pattern.permute.xlu1 %v2494_v15 }
  0x6a   :  { %1010 = vperm.xlu1 %2296, %v1008_v11  }
  0x6d   :  { %2300 = vset.pattern.permute.xlu0 %v2492_v3 }
  0x6e   :  { %2297 = vset.pattern.permute.xlu1 %v2492_v3 }
  0xc5   :  { %v403_v18 = vpop.permute.xlu0 %402 }
  0xc6   :  { %2050 = vmatmul.mubr.msk.bf16.vlgmr.msra.gmra.mxu0 %vm148_vm1, %v403_v18  ;;  %v1833_v18 = vsel %vm1832_vm8, 1, %v2489_v38 }
  0xc7   :  { %2062 = vmatpush3.bf16.msra.mxu0 %v2603_v12  ;;  %2065 = vmatprep.mubr.msk.bf16.mxu0 %vm2484_vm0, %v2483_v1 }
  0xc8   :  { %2063 = vmatprep.subr.bf16.mxu0 %v2483_v1  ;;  %1835 = vperm.xlu1 %2297, %v1833_v18  }
  0xc9   :  { %v617_v61 = vpop.permute.xlu0 %616 }
  0xcb   :  { %2064 = vmatpush3.bf16.msra.mxu0 %v2618_v14 }
  0xcc   :  { %2077 = vmatprep.subr.bf16.mxu0 %v2483_v1 }
 0x114   :  { %v186_v20 = vpop.f32.mrf.mxu0 }
 0x115   :  { %v187_v21 = vadd.f32 %v186_v20, %v135_v19  ;;  %v1205_v19 = vsel %vm1204_vm9, 1, %v2489_v38  ;;  %v2495_v20 = vmov 4  }
 0x116   :  { %v2019_v22 = vpop.f32.mrf.mxu0  ;;  %2299 = vset.pattern.permute.xlu1 %v2495_v20 }
 0x117   :  { %v192_v23 = vmax.f32 %v187_v21, 0.0  ;;  %1207 = vperm.xlu1 %2299, %v1205_v19   ;;  %v2732_v21 = vpop.permute.xlu0 %1442 }
 0x118   :  { %v189_v24 = vpop.f32.mrf.mxu0 }
 0x119   :  { %v193_v25 = vpack.c.bf16 %v192_v23, %v192_v23 }
 0x11a   :  { %v2020_v26 = vpop.f32.mrf.mxu0 }
 0x11b   :  { %2026 = vmatmul.mubr.msk.bf16.vlgmr.msra.gmra.mxu1 %vm148_vm1, %v193_v25  ;;  %v2734_v22 = vpop.permute.xlu0 %582  ;;  %v2741_v25 = vld [vmem:[%s2983_s9] ss:$0 sm:$0xff] }
 0x11c   :  { %2041 = vmatprep.mubr.msk.bf16.mxu1 %vm2484_vm0, %v2483_v1  ;;  %v305_v27 = vpop.f32.mrf.mxu0  ;;  %2038 = vmatpush3.bf16.msra.mxu1 %v2648_v31  ;;  %vm584_vm12 = vcmp.eq.s32.totalorder %v2734_v22, 1 }
 0x11d   :  { %2039 = vmatprep.subr.bf16.mxu1 %v2483_v1 }
 0x11e   :  { %v2035_v28 = vpop.f32.mrf.mxu0 }
 0x11f   :  { %v2736_v23 = vpop.permute.xlu0 %1622 }
 0x120   :  { %v308_v29 = vpop.f32.mrf.mxu0  ;;  %2040 = vmatpush3.bf16.msra.mxu1 %v2652_v32  ;;  %vm1624_vm6 = vcmp.eq.s32.totalorder %v2736_v23, 1 }
 0x121   :  { %2053 = vmatprep.subr.bf16.mxu1 %v2483_v1 }
 0x122   :  { %v2036_v30 = vpop.f32.mrf.mxu0 }
 0x123   :  { %v380_v24 = vpop.permute.xlu0 %379 }
 0x124   :  { %vm381_vm10 = vcmp.eq.s32.totalorder %v380_v24, 1 }
 0x186   :  { %v441_v42 = vpop.f32.mrf.mxu0 }
 0x187   :  { %v442_v56 = vadd.f32 %v441_v42, %v386_v55  ;;  %v831_v55 = vpop.permute.xlu1 %830 }
 0x188   :  { %v2051_v44 = vpop.f32.mrf.mxu0 }
 0x189   :  { %v447_v59 = vmax.f32 %v442_v56, 0.0  ;;  %v2496_v56 = vmov 1983009808  }
 0x18a   :  { %v444_v45 = vpop.f32.mrf.mxu0 }
 0x18b   :  { %v448_v60 = vpack.c.bf16 %v447_v59, %v447_v59 }
 0x18c   :  { %v2052_v47 = vpop.f32.mrf.mxu0 }
 0x1db   :  { %v249_v49 = vpop.f32.mrf.mxu1 }
 0x1dc   :  { %v250_v50 = vadd.f32 %v2678_v48, %v249_v49  ;;  %v600_v49 = vld [vmem:[%s2976_s2] sm:$0x3] }
 0x1dd   :  { %v2027_v51 = vpop.f32.mrf.mxu1 }
 0x1de   :  { %v311_v52 = vadd.f32 %v305_v27, %v250_v50 }
 0x1df   :  { %v252_v53 = vpop.f32.mrf.mxu1 }
 0x1e0   :  { %2309 = vtanh.f32 %v311_v52 }
 0x1e1   :  { %v2028_v54 = vpop.f32.mrf.mxu1 }
 0x1ed   :  { %v2310_v57 = vpop.eup %2309 }
 0x1ee   :  { %v313_v58 = vpack.c.bf16 %v2310_v57, %v2310_v57  ;;  %v588_v57 = vunpack.c.l.s4 %v2496_v56 }
 0x1f0   :  { %2042 = vmatmul.mubr.msk.bf16.vlgmr.msra.gmra.mxu1 %vm148_vm1, %v313_v58  ;;  %2066 = vmatmul.mubr.msk.bf16.vlgmr.msra.gmra.mxu0 %vm148_vm1, %v313_v58  ;;  %v589_v58 = vunpack.c.0.s8 %v588_v57 }
 0x1f1   :  { %2054 = vmatpush3.bf16.msra.mxu1 %v2616_v13  ;;  %2057 = vmatprep.mubr.msk.bf16.mxu1 %vm2484_vm0, %v2483_v1 }
 0x1f2   :  { %2055 = vmatprep.subr.bf16.mxu1 %v2483_v1  ;;  %2078 = vmatpush3.bf16.msra.mxu0 %v2594_v7 }
 0x1f3   :  { %2079 = vmatprep.subr.bf16.mxu0 %v2483_v1  ;;  %2081 = vmatprep.mubr.msk.bf16.mxu0 %vm2484_vm0, %v2483_v1 }
 0x1f5   :  { %2056 = vmatpush3.bf16.msra.mxu1 %v2624_v17 }
 0x1f6   :  { %2080 = vmatpush3.bf16.msra.mxu0 %v2597_v8  ;;  %2069 = vmatprep.subr.bf16.mxu1 %v2483_v1 }
 0x1f7   :  { %2093 = vmatprep.subr.bf16.mxu0 %v2483_v1 }
 0x1f8   :  { %2058 = vmatmul.mubr.msk.bf16.vlgmr.msra.gmra.mxu1 %vm148_vm1, %v448_v60  ;;  %v2779_v60 = vsub.s32 %v589_v58, %v2586_v4 }
 0x1f9   :  { %2082 = vmatmul.mubr.msk.bf16.vlgmr.msra.gmra.mxu0 %vm148_vm1, %v617_v61  ;;  %2070 = vmatpush3.bf16.msra.mxu1 %v2648_v31 }
 0x1fa   :  { %2094 = vmatpush3.bf16.msra.mxu0 %v2603_v12  ;;  %2071 = vmatprep.subr.bf16.mxu1 %v2483_v1 }
 0x1fb   :  { %2095 = vmatprep.subr.bf16.mxu0 %v2483_v1  ;;  %2073 = vmatprep.mubr.msk.bf16.mxu1 %vm2484_vm0, %v2483_v1 }
 0x1fc   :  { %2097 = vmatprep.mubr.msk.bf16.mxu0 %vm2484_vm0, %v2483_v1 }
 0x1fd   :  { %2072 = vmatpush3.bf16.msra.mxu1 %v2652_v32 }
 0x1fe   :  { %2096 = vmatpush3.bf16.msra.mxu0 %v2618_v14  ;;  %2085 = vmatprep.subr.bf16.mxu1 %v2483_v1 }
 0x1ff   :  { %2109 = vmatprep.subr.bf16.mxu0 %v2483_v1 }
 0x2b0   :  { %v369_v26 = vpop.f32.mrf.mxu1  ;;  %v526_v27 = vpop.f32.mrf.mxu0 }
 0x2b1   :  { %v370_v28 = vadd.f32 %v2741_v25, %v369_v26 }
 0x2b2   :  { %v2043_v29 = vpop.f32.mrf.mxu1  ;;  %v2067_v30 = vpop.f32.mrf.mxu0 }
 0x2b3   :  { %v382_v33 = vsel %vm381_vm10, %v370_v28, 0.0 }
 0x2b4   :  { %384 = vst.msk [vmem:[#allocation13] sm:$0x3] %vm383_vm11, %v382_v33  ;;  %v372_v34 = vpop.f32.mrf.mxu1  ;;  %v529_v35 = vpop.f32.mrf.mxu0 }
 0x2b5   :  { %v1027_v35 = vld [vmem:[#allocation2 + $0x1] sm:$0x1] }
 0x2b6   :  { %v2044_v36 = vpop.f32.mrf.mxu1  ;;  %v2068_v37 = vpop.f32.mrf.mxu0 }
 0x2b7   :  { %v1230_v36 = vpop.permute.xlu1 %1229 }
 0x2b8   :  { %v486_v38 = vpop.f32.mrf.mxu1 }
 0x2b9   :  { %v487_v39 = vadd.f32 %v2678_v48, %v486_v38  ;;  %v655_v40 = vpop.f32.mrf.mxu0 }
 0x2ba   :  { %v2059_v41 = vpop.f32.mrf.mxu1  ;;  %v656_v50 = vadd.f32 %v655_v40, %v600_v49 }
 0x2bb   :  { %v532_v42 = vadd.f32 %v526_v27, %v487_v39  ;;  %v2083_v43 = vpop.f32.mrf.mxu0  ;;  %v814_v27 = vld [vmem:[%s2976_s2] sm:$0x3]  ;;  %v2816_v37 = vpop.permute.xlu1 %1655 }
 0x2bc   :  { %v489_v44 = vpop.f32.mrf.mxu1  ;;  %v661_v53 = vmax.f32 %v656_v50, 0.0 }
 0x2bd   :  { %2311 = vtanh.f32 %v532_v42  ;;  %v658_v45 = vpop.f32.mrf.mxu0 }
 0x2be   :  { %v2060_v46 = vpop.f32.mrf.mxu1  ;;  %v662_v54 = vpack.c.bf16 %v661_v53, %v661_v53 }
 0x2bf   :  { %v2084_v47 = vpop.f32.mrf.mxu0  ;;  %v2818_v38 = vpop.permute.xlu1 %1409 }
 0x2c0   :  { %vm1411_vm5 = vcmp.eq.s32.totalorder %v2818_v38, 1 }
 0x2c3   :  { %v797_v39 = vpop.permute.xlu1 %796 }
 0x2c4   :  { %vm798_vm14 = vcmp.eq.s32.totalorder %v797_v39, 1 }
 0x2c7   :  { %v2820_v40 = vpop.permute.xlu1 %1010 }
 0x2c8   :  { %vm1012_vm2 = vcmp.eq.s32.totalorder %v2820_v40, 1 }
 0x2ca   :  { %v2312_v51 = vpop.eup %2311 }
 0x2cb   :  { %v534_v52 = vpack.c.bf16 %v2312_v51, %v2312_v51  ;;  %v2822_v41 = vpop.permute.xlu1 %1835 }
 0x2cd   :  { %2074 = vmatmul.mubr.msk.bf16.vlgmr.msra.gmra.mxu1 %vm148_vm1, %v534_v52  ;;  %2098 = vmatmul.mubr.msk.bf16.vlgmr.msra.gmra.mxu0 %vm148_vm1, %v534_v52 }
 0x2ce   :  { %2086 = vmatpush3.bf16.msra.mxu1 %v2616_v13  ;;  %2089 = vmatprep.mubr.msk.bf16.mxu1 %vm2484_vm0, %v2483_v1 }
 0x2cf   :  { %2087 = vmatprep.subr.bf16.mxu1 %v2483_v1  ;;  %2110 = vmatpush3.bf16.msra.mxu0 %v2594_v7  ;;  %v2824_v42 = vpop.permute.xlu1 %1207 }
 0x2d0   :  { %2111 = vmatprep.subr.bf16.mxu0 %v2483_v1  ;;  %2113 = vmatprep.mubr.msk.bf16.mxu0 %vm2484_vm0, %v2483_v1  ;;  %vm1209_vm4 = vcmp.eq.s32.totalorder %v2824_v42, 1 }
 0x2d2   :  { %2088 = vmatpush3.bf16.msra.mxu1 %v2624_v17 }
 0x2d3   :  { %2112 = vmatpush3.bf16.msra.mxu0 %v2597_v8  ;;  %2101 = vmatprep.subr.bf16.mxu1 %v2483_v1 }
 0x2d4   :  { %2125 = vmatprep.subr.bf16.mxu0 %v2483_v1 }
 0x2d5   :  { %2090 = vmatmul.mubr.msk.bf16.vlgmr.msra.gmra.mxu1 %vm148_vm1, %v662_v54 }
 0x2d6   :  { %2114 = vmatmul.mubr.msk.bf16.vlgmr.msra.gmra.mxu0 %vm148_vm1, %v831_v55  ;;  %2102 = vmatpush3.bf16.msra.mxu1 %v2648_v31 }
 0x2d7   :  { %2126 = vmatpush3.bf16.msra.mxu0 %v2603_v12  ;;  %2103 = vmatprep.subr.bf16.mxu1 %v2483_v1 }
 0x2d8   :  { %2127 = vmatprep.subr.bf16.mxu0 %v2483_v1  ;;  %2105 = vmatprep.mubr.msk.bf16.mxu1 %vm2484_vm0, %v2483_v1 }
 0x2d9   :  { %2129 = vmatprep.mubr.msk.bf16.mxu0 %vm2484_vm0, %v2483_v1 }
 0x2da   :  { %2104 = vmatpush3.bf16.msra.mxu1 %v2652_v32 }
 0x2db   :  { %2128 = vmatpush3.bf16.msra.mxu0 %v2618_v14  ;;  %2117 = vmatprep.subr.bf16.mxu1 %v2483_v1 }
 0x2dc   :  { %2141 = vmatprep.subr.bf16.mxu0 %v2483_v1 }
 0x38d   :  { %v572_v59 = vpop.f32.mrf.mxu1  ;;  %v740_v61 = vpop.f32.mrf.mxu0 }
 0x38e   :  { %v573_v62 = vadd.f32 %v2741_v25, %v572_v59 }
 0x38f   :  { %v2075_v63 = vpop.f32.mrf.mxu1  ;;  %v2099_v0 = vpop.f32.mrf.mxu0 }
 0x390   :  { %v585_v2 = vsel %vm584_vm12, %v573_v62, 0.0 }
 0x391   :  { %v593_v3 = vrot.slane %v585_v2, %v2779_v60  ;;  %v575_v5 = vpop.f32.mrf.mxu1  ;;  %v743_v6 = vpop.f32.mrf.mxu0 }
 0x392   :  { %v1028_v5 = vld [vmem:[%s2976_s2] sm:$0x3] }
 0x393   :  { %594 = vrot.lane.b32.xlu1 %v593_v3, %s2488_s25  ;;  %v2076_v9 = vpop.f32.mrf.mxu1  ;;  %v2100_v10 = vpop.f32.mrf.mxu0 }
 0x395   :  { %v700_v11 = vpop.f32.mrf.mxu1 }
 0x396   :  { %v701_v15 = vadd.f32 %v2678_v48, %v700_v11  ;;  %v869_v16 = vpop.f32.mrf.mxu0 }
 0x397   :  { %v2091_v4 = vpop.f32.mrf.mxu1  ;;  %v870_v28 = vadd.f32 %v869_v16, %v814_v27 }
 0x398   :  { %v746_v18 = vadd.f32 %v740_v61, %v701_v15  ;;  %v2115_v19 = vpop.f32.mrf.mxu0 }
 0x399   :  { %v703_v20 = vpop.f32.mrf.mxu1  ;;  %v875_v33 = vmax.f32 %v870_v28, 0.0 }
 0x39a   :  { %2313 = vtanh.f32 %v746_v18  ;;  %v872_v22 = vpop.f32.mrf.mxu0 }
 0x39b   :  { %v2092_v24 = vpop.f32.mrf.mxu1  ;;  %v876_v34 = vpack.c.bf16 %v875_v33, %v875_v33 }
 0x39c   :  { %v2116_v26 = vpop.f32.mrf.mxu0 }
 0x3a7   :  { %v2314_v29 = vpop.eup %2313 }
 0x3a8   :  { %v748_v30 = vpack.c.bf16 %v2314_v29, %v2314_v29 }
 0x3aa   :  { %2106 = vmatmul.mubr.msk.bf16.vlgmr.msra.gmra.mxu1 %vm148_vm1, %v748_v30  ;;  %2130 = vmatmul.mubr.msk.bf16.vlgmr.msra.gmra.mxu0 %vm148_vm1, %v748_v30 }
 0x3ab   :  { %2118 = vmatpush3.bf16.msra.mxu1 %v2616_v13  ;;  %2121 = vmatprep.mubr.msk.bf16.mxu1 %vm2484_vm0, %v2483_v1 }
 0x3ac   :  { %2119 = vmatprep.subr.bf16.mxu1 %v2483_v1  ;;  %2142 = vmatpush3.bf16.msra.mxu0 %v2594_v7 }
 0x3ad   :  { %2143 = vmatprep.subr.bf16.mxu0 %v2483_v1  ;;  %2145 = vmatprep.mubr.msk.bf16.mxu0 %vm2484_vm0, %v2483_v1 }
 0x3af   :  { %2120 = vmatpush3.bf16.msra.mxu1 %v2624_v17 }
 0x3b0   :  { %2144 = vmatpush3.bf16.msra.mxu0 %v2597_v8  ;;  %2133 = vmatprep.subr.bf16.mxu1 %v2483_v1 }
 0x3b1   :  { %2157 = vmatprep.subr.bf16.mxu0 %v2483_v1 }
 0x3b2   :  { %2122 = vmatmul.mubr.msk.bf16.vlgmr.msra.gmra.mxu1 %vm148_vm1, %v876_v34 }
 0x3b3   :  { %2146 = vmatmul.mubr.msk.bf16.vlgmr.msra.gmra.mxu0 %vm148_vm1, %v1027_v35  ;;  %2134 = vmatpush3.bf16.msra.mxu1 %v2648_v31 }
 0x3b4   :  { %2158 = vmatpush3.bf16.msra.mxu0 %v2603_v12  ;;  %2135 = vmatprep.subr.bf16.mxu1 %v2483_v1 }
 0x3b5   :  { %2159 = vmatprep.subr.bf16.mxu0 %v2483_v1  ;;  %2137 = vmatprep.mubr.msk.bf16.mxu1 %vm2484_vm0, %v2483_v1 }
 0x3b6   :  { %2161 = vmatprep.mubr.msk.bf16.mxu0 %vm2484_vm0, %v2483_v1 }
 0x3b7   :  { %2136 = vmatpush3.bf16.msra.mxu1 %v2652_v32 }
 0x3b8   :  { %2160 = vmatpush3.bf16.msra.mxu0 %v2618_v14  ;;  %2149 = vmatprep.subr.bf16.mxu1 %v2483_v1 }
 0x3b9   :  { %2173 = vmatprep.subr.bf16.mxu0 %v2483_v1 }
 0x405   :  { %v595_v43 = vpop.permute.xlu1 %594 }
 0x406   :  { %598 = vst.msk [vmem:[#allocation13] sm:$0x3] %vm597_vm13, %v595_v43 }
 0x46a   :  { %v786_v44 = vpop.f32.mrf.mxu1  ;;  %v954_v45 = vpop.f32.mrf.mxu0 }
 0x46b   :  { %v787_v46 = vadd.f32 %v2741_v25, %v786_v44 }
 0x46c   :  { %v2107_v47 = vpop.f32.mrf.mxu1  ;;  %v2131_v49 = vpop.f32.mrf.mxu0 }
 0x46d   :  { %v799_v50 = vsel %vm798_vm14, %v787_v46, 0.0  ;;  %v1213_v47 = vld [vmem:[%s2976_s2] sm:$0x3] }
 0x46e   :  { %v789_v51 = vpop.f32.mrf.mxu1  ;;  %v957_v52 = vpop.f32.mrf.mxu0  ;;  %v807_v53 = vrot.slane %v799_v50, %v2779_v60 }
 0x470   :  { %808 = vrot.lane.b32.xlu1 %v807_v53, %s2478_s23  ;;  %v2108_v54 = vpop.f32.mrf.mxu1  ;;  %v2132_v55 = vpop.f32.mrf.mxu0 }
 0x472   :  { %v914_v56 = vpop.f32.mrf.mxu1 }
 0x473   :  { %v915_v57 = vadd.f32 %v2678_v48, %v914_v56  ;;  %v1066_v58 = vpop.f32.mrf.mxu0 }
 0x474   :  { %v2123_v59 = vpop.f32.mrf.mxu1  ;;  %v1067_v6 = vadd.f32 %v1066_v58, %v1028_v5 }
 0x475   :  { %v960_v61 = vadd.f32 %v954_v45, %v915_v57  ;;  %v2147_v62 = vpop.f32.mrf.mxu0 }
 0x476   :  { %v917_v63 = vpop.f32.mrf.mxu1  ;;  %v1072_v11 = vmax.f32 %v1067_v6, 0.0 }
 0x477   :  { %2315 = vtanh.f32 %v960_v61  ;;  %v1069_v0 = vpop.f32.mrf.mxu0 }
 0x478   :  { %v2124_v2 = vpop.f32.mrf.mxu1  ;;  %v1073_v15 = vpack.c.bf16 %v1072_v11, %v1072_v11 }
 0x479   :  { %v2148_v3 = vpop.f32.mrf.mxu0 }
 0x484   :  { %v2316_v9 = vpop.eup %2315 }
 0x485   :  { %v962_v10 = vpack.c.bf16 %v2316_v9, %v2316_v9 }
 0x487   :  { %2138 = vmatmul.mubr.msk.bf16.vlgmr.msra.gmra.mxu1 %vm148_vm1, %v962_v10  ;;  %2162 = vmatmul.mubr.msk.bf16.vlgmr.msra.gmra.mxu0 %vm148_vm1, %v962_v10 }
 0x488   :  { %2150 = vmatpush3.bf16.msra.mxu1 %v2616_v13  ;;  %2153 = vmatprep.mubr.msk.bf16.mxu1 %vm2484_vm0, %v2483_v1 }
 0x489   :  { %2151 = vmatprep.subr.bf16.mxu1 %v2483_v1  ;;  %2174 = vmatpush3.bf16.msra.mxu0 %v2594_v7 }
 0x48a   :  { %2175 = vmatprep.subr.bf16.mxu0 %v2483_v1  ;;  %2177 = vmatprep.mubr.msk.bf16.mxu0 %vm2484_vm0, %v2483_v1 }
 0x48c   :  { %2152 = vmatpush3.bf16.msra.mxu1 %v2624_v17 }
 0x48d   :  { %2176 = vmatpush3.bf16.msra.mxu0 %v2597_v8  ;;  %2165 = vmatprep.subr.bf16.mxu1 %v2483_v1 }
 0x48e   :  { %2189 = vmatprep.subr.bf16.mxu0 %v2483_v1 }
 0x48f   :  { %2154 = vmatmul.mubr.msk.bf16.vlgmr.msra.gmra.mxu1 %vm148_vm1, %v1073_v15 }
 0x490   :  { %2178 = vmatmul.mubr.msk.bf16.vlgmr.msra.gmra.mxu0 %vm148_vm1, %v1230_v36  ;;  %2166 = vmatpush3.bf16.msra.mxu1 %v2648_v31 }
 0x491   :  { %2190 = vmatpush3.bf16.msra.mxu0 %v2603_v12  ;;  %2167 = vmatprep.subr.bf16.mxu1 %v2483_v1 }
 0x492   :  { %2191 = vmatprep.subr.bf16.mxu0 %v2483_v1  ;;  %2169 = vmatprep.mubr.msk.bf16.mxu1 %vm2484_vm0, %v2483_v1 }
 0x493   :  { %2193 = vmatprep.mubr.msk.bf16.mxu0 %vm2484_vm0, %v2483_v1 }
 0x494   :  { %2168 = vmatpush3.bf16.msra.mxu1 %v2652_v32 }
 0x495   :  { %2192 = vmatpush3.bf16.msra.mxu0 %v2618_v14  ;;  %2181 = vmatprep.subr.bf16.mxu1 %v2483_v1 }
 0x496   :  { %2205 = vmatprep.subr.bf16.mxu0 %v2483_v1 }
 0x4e2   :  { %v809_v16 = vpop.permute.xlu1 %808 }
 0x4e3   :  { %812 = vst.msk [vmem:[#allocation13] sm:$0x3] %vm811_vm15, %v809_v16 }
 0x547   :  { %v1000_v4 = vpop.f32.mrf.mxu1  ;;  %v1151_v18 = vpop.f32.mrf.mxu0 }
 0x548   :  { %v1001_v19 = vadd.f32 %v2741_v25, %v1000_v4  ;;  %v1426_v4 = vld [vmem:[%s2976_s2] sm:$0x3] }
 0x549   :  { %v2139_v20 = vpop.f32.mrf.mxu1  ;;  %v2163_v22 = vpop.f32.mrf.mxu0 }
 0x54a   :  { %v1013_v24 = vsel %vm1012_vm2, %v1001_v19, 0.0 }
 0x54b   :  { %v1021_v26 = vrot.slane %v1013_v24, %v2779_v60  ;;  %v1003_v27 = vpop.f32.mrf.mxu1  ;;  %v1154_v28 = vpop.f32.mrf.mxu0 }
 0x54d   :  { %1022 = vrot.lane.b32.xlu1 %v1021_v26, %s2486_s6  ;;  %v2140_v29 = vpop.f32.mrf.mxu1  ;;  %v2164_v30 = vpop.f32.mrf.mxu0 }
 0x54f   :  { %v1111_v33 = vpop.f32.mrf.mxu1 }
 0x550   :  { %v1112_v34 = vadd.f32 %v2678_v48, %v1111_v33  ;;  %v1268_v35 = vpop.f32.mrf.mxu0 }
 0x551   :  { %v2155_v36 = vpop.f32.mrf.mxu1  ;;  %v1269_v49 = vadd.f32 %v1268_v35, %v1213_v47  ;;  %v1639_v47 = vld [vmem:[%s2976_s2] sm:$0x3]  ;;  %s2497_s2 = smov [#allocation13]  }
 0x552   :  { %v1157_v39 = vadd.f32 %v1151_v18, %v1112_v34  ;;  %v2179_v40 = vpop.f32.mrf.mxu0 }
 0x553   :  { %v1114_v43 = vpop.f32.mrf.mxu1  ;;  %v1274_v52 = vmax.f32 %v1269_v49, 0.0 }
 0x554   :  { %2317 = vtanh.f32 %v1157_v39  ;;  %v1271_v44 = vpop.f32.mrf.mxu0 }
 0x555   :  { %v2156_v45 = vpop.f32.mrf.mxu1  ;;  %v1275_v53 = vpack.c.bf16 %v1274_v52, %v1274_v52 }
 0x556   :  { %v2180_v46 = vpop.f32.mrf.mxu0 }
 0x561   :  { %v2318_v50 = vpop.eup %2317 }
 0x562   :  { %v1159_v51 = vpack.c.bf16 %v2318_v50, %v2318_v50 }
 0x564   :  { %2170 = vmatmul.mubr.msk.bf16.vlgmr.msra.gmra.mxu1 %vm148_vm1, %v1159_v51  ;;  %2194 = vmatmul.mubr.msk.bf16.vlgmr.msra.gmra.mxu0 %vm148_vm1, %v1159_v51 }
 0x565   :  { %2182 = vmatpush3.bf16.msra.mxu1 %v2616_v13  ;;  %2185 = vmatprep.mubr.msk.bf16.mxu1 %vm2484_vm0, %v2483_v1 }
 0x566   :  { %2183 = vmatprep.subr.bf16.mxu1 %v2483_v1  ;;  %2206 = vmatpush3.bf16.msra.mxu0 %v2594_v7 }
 0x567   :  { %2207 = vmatprep.subr.bf16.mxu0 %v2483_v1  ;;  %2209 = vmatprep.mubr.msk.bf16.mxu0 %vm2484_vm0, %v2483_v1 }
 0x569   :  { %2184 = vmatpush3.bf16.msra.mxu1 %v2624_v17 }
 0x56a   :  { %2208 = vmatpush3.bf16.msra.mxu0 %v2597_v8  ;;  %2197 = vmatprep.subr.bf16.mxu1 %v2483_v1 }
 0x56b   :  { %2221 = vmatprep.subr.bf16.mxu0 %v2483_v1 }
 0x56c   :  { %2186 = vmatmul.mubr.msk.bf16.vlgmr.msra.gmra.mxu1 %vm148_vm1, %v1275_v53 }
 0x56d   :  { %2210 = vmatmul.mubr.msk.bf16.vlgmr.msra.gmra.mxu0 %vm148_vm1, %v2732_v21  ;;  %2198 = vmatpush3.bf16.msra.mxu1 %v2648_v31 }
 0x56e   :  { %2222 = vmatpush3.bf16.msra.mxu0 %v2603_v12  ;;  %2199 = vmatprep.subr.bf16.mxu1 %v2483_v1 }
 0x56f   :  { %2223 = vmatprep.subr.bf16.mxu0 %v2483_v1  ;;  %2201 = vmatprep.mubr.msk.bf16.mxu1 %vm2484_vm0, %v2483_v1 }
 0x570   :  { %2225 = vmatprep.mubr.msk.bf16.mxu0 %vm2484_vm0, %v2483_v1 }
 0x571   :  { %2200 = vmatpush3.bf16.msra.mxu1 %v2652_v32 }
 0x572   :  { %2224 = vmatpush3.bf16.msra.mxu0 %v2618_v14  ;;  %2213 = vmatprep.subr.bf16.mxu1 %v2483_v1 }
 0x573   :  { %2237 = vmatprep.subr.bf16.mxu0 %v2483_v1 }
 0x5bf   :  { %v1023_v21 = vpop.permute.xlu1 %1022 }
 0x5c0   :  { %1026 = vst.msk [vmem:[#allocation13] sm:$0x3] %vm1025_vm3, %v1023_v21 }
 0x624   :  { %v1197_v54 = vpop.f32.mrf.mxu1  ;;  %v1353_v55 = vpop.f32.mrf.mxu0 }
 0x625   :  { %v1198_v56 = vadd.f32 %v2741_v25, %v1197_v54 }
 0x626   :  { %v2171_v57 = vpop.f32.mrf.mxu1  ;;  %v2195_v58 = vpop.f32.mrf.mxu0 }
 0x627   :  { %v1210_v59 = vsel %vm1209_vm4, %v1198_v56, 0.0 }
 0x628   :  { %1211 = vst.msk [vmem:[#allocation13 + $0x2] sm:$0x3] %vm383_vm11, %v1210_v59  ;;  %v1200_v61 = vpop.f32.mrf.mxu1  ;;  %v1356_v62 = vpop.f32.mrf.mxu0 }
 0x62a   :  { %v2172_v63 = vpop.f32.mrf.mxu1  ;;  %v2196_v0 = vpop.f32.mrf.mxu0 }
 0x62c   :  { %v1313_v2 = vpop.f32.mrf.mxu1 }
 0x62d   :  { %v1314_v3 = vadd.f32 %v2678_v48, %v1313_v2  ;;  %v1481_v5 = vpop.f32.mrf.mxu0 }
 0x62e   :  { %v2187_v6 = vpop.f32.mrf.mxu1  ;;  %v1482_v18 = vadd.f32 %v1481_v5, %v1426_v4 }
 0x62f   :  { %v1359_v9 = vadd.f32 %v1353_v55, %v1314_v3  ;;  %v2211_v42 = vpop.f32.mrf.mxu0 }
 0x630   :  { %v1316_v10 = vpop.f32.mrf.mxu1  ;;  %v1487_v22 = vmax.f32 %v1482_v18, 0.0 }
 0x631   :  { %2319 = vtanh.f32 %v1359_v9  ;;  %v1484_v11 = vpop.f32.mrf.mxu0 }
 0x632   :  { %v2188_v15 = vpop.f32.mrf.mxu1  ;;  %v1488_v24 = vpack.c.bf16 %v1487_v22, %v1487_v22 }
 0x633   :  { %v2212_v16 = vpop.f32.mrf.mxu0 }
 0x63e   :  { %v2320_v19 = vpop.eup %2319 }
 0x63f   :  { %v1361_v20 = vpack.c.bf16 %v2320_v19, %v2320_v19 }
 0x641   :  { %2202 = vmatmul.mubr.msk.bf16.vlgmr.msra.gmra.mxu1 %vm148_vm1, %v1361_v20  ;;  %2226 = vmatmul.mubr.msk.bf16.vlgmr.msra.gmra.mxu0 %vm148_vm1, %v1361_v20 }
 0x642   :  { %2214 = vmatpush3.bf16.msra.mxu1 %v2616_v13  ;;  %2217 = vmatprep.mubr.msk.bf16.mxu1 %vm2484_vm0, %v2483_v1 }
 0x643   :  { %2215 = vmatprep.subr.bf16.mxu1 %v2483_v1  ;;  %2238 = vmatpush3.bf16.msra.mxu0 %v2594_v7 }
 0x644   :  { %2239 = vmatprep.subr.bf16.mxu0 %v2483_v1  ;;  %2241 = vmatprep.mubr.msk.bf16.mxu0 %vm2484_vm0, %v2483_v1 }
 0x646   :  { %2216 = vmatpush3.bf16.msra.mxu1 %v2624_v17 }
 0x647   :  { %2240 = vmatpush3.bf16.msra.mxu0 %v2597_v8  ;;  %2229 = vmatprep.subr.bf16.mxu1 %v2483_v1 }
 0x648   :  { %2253 = vmatprep.subr.bf16.mxu0 %v2483_v1 }
 0x649   :  { %2218 = vmatmul.mubr.msk.bf16.vlgmr.msra.gmra.mxu1 %vm148_vm1, %v1488_v24 }
 0x64a   :  { %2242 = vmatmul.mubr.msk.bf16.vlgmr.msra.gmra.mxu0 %vm148_vm1, %v2816_v37  ;;  %2230 = vmatpush3.bf16.msra.mxu1 %v2648_v31 }
 0x64b   :  { %2254 = vmatpush3.bf16.msra.mxu0 %v2603_v12  ;;  %2231 = vmatprep.subr.bf16.mxu1 %v2483_v1 }
 0x64c   :  { %2255 = vmatprep.subr.bf16.mxu0 %v2483_v1  ;;  %2233 = vmatprep.mubr.msk.bf16.mxu1 %vm2484_vm0, %v2483_v1 }
 0x64d   :  { %2257 = vmatprep.mubr.msk.bf16.mxu0 %vm2484_vm0, %v2483_v1 }
 0x64e   :  { %2232 = vmatpush3.bf16.msra.mxu1 %v2652_v32 }
 0x64f   :  { %2256 = vmatpush3.bf16.msra.mxu0 %v2618_v14  ;;  %2245 = vmatprep.subr.bf16.mxu1 %v2483_v1 }
 0x701   :  { %v1399_v7 = vpop.f32.mrf.mxu1  ;;  %v1566_v8 = vpop.f32.mrf.mxu0 }
 0x702   :  { %v1400_v12 = vadd.f32 %v2741_v25, %v1399_v7 }
 0x703   :  { %v2203_v37 = vpop.f32.mrf.mxu1  ;;  %v2227_v26 = vpop.f32.mrf.mxu0 }
 0x704   :  { %v1412_v27 = vsel %vm1411_vm5, %v1400_v12, 0.0 }
 0x705   :  { %v1420_v28 = vrot.slane %v1412_v27, %v2779_v60  ;;  %v1402_v29 = vpop.f32.mrf.mxu1  ;;  %v1569_v30 = vpop.f32.mrf.mxu0 }
 0x707   :  { %1421 = vrot.lane.b32.xlu0 %v1420_v28, %s2488_s25  ;;  %v2204_v33 = vpop.f32.mrf.mxu1  ;;  %v2228_v34 = vpop.f32.mrf.mxu0 }
 0x709   :  { %v1526_v14 = vpop.f32.mrf.mxu1 }
 0x70a   :  { %v1527_v35 = vadd.f32 %v2678_v48, %v1526_v14  ;;  %v1694_v36 = vpop.f32.mrf.mxu0 }
 0x70b   :  { %v2219_v38 = vpop.f32.mrf.mxu1  ;;  %v1695_v49 = vadd.f32 %v1694_v36, %v1639_v47 }
 0x70c   :  { %v1572_v39 = vadd.f32 %v1566_v8, %v1527_v35  ;;  %v2243_v40 = vpop.f32.mrf.mxu0 }
 0x70d   :  { %v1529_v43 = vpop.f32.mrf.mxu1  ;;  %v1700_v52 = vmax.f32 %v1695_v49, 0.0 }
 0x70e   :  { %2321 = vtanh.f32 %v1572_v39  ;;  %v1697_v44 = vpop.f32.mrf.mxu0 }
 0x70f   :  { %v2220_v45 = vpop.f32.mrf.mxu1  ;;  %v1701_v53 = vpack.c.bf16 %v1700_v52, %v1700_v52 }
 0x710   :  { %v2244_v46 = vpop.f32.mrf.mxu0 }
 0x71b   :  { %v2322_v50 = vpop.eup %2321 }
 0x71c   :  { %v1574_v51 = vpack.c.bf16 %v2322_v50, %v2322_v50 }
 0x71e   :  { %2234 = vmatmul.mubr.msk.bf16.vlgmr.msra.gmra.mxu1 %vm148_vm1, %v1574_v51  ;;  %2258 = vmatmul.mubr.msk.bf16.vlgmr.msra.gmra.mxu0 %vm148_vm1, %v1574_v51 }
 0x71f   :  { %2246 = vmatpush3.bf16.msra.mxu1 %v2616_v13  ;;  %2249 = vmatprep.mubr.msk.bf16.mxu1 %vm2484_vm0, %v2483_v1 }
 0x720   :  { %2247 = vmatprep.subr.bf16.mxu1 %v2483_v1 }
 0x723   :  { %2248 = vmatpush3.bf16.msra.mxu1 %v2624_v17 }
 0x724   :  { %2261 = vmatprep.subr.bf16.mxu1 %v2483_v1 }
 0x726   :  { %2250 = vmatmul.mubr.msk.bf16.vlgmr.msra.gmra.mxu1 %vm148_vm1, %v1701_v53 }
 0x727   :  { %2262 = vmatpush3.bf16.msra.mxu1 %v2648_v31  ;;  %2265 = vmatprep.mubr.msk.bf16.mxu1 %vm2484_vm0, %v2483_v1  ;;  %vm1837_vm0 = vcmp.eq.s32.totalorder %v2822_v41, 1 }
 0x728   :  { %2263 = vmatprep.subr.bf16.mxu1 %v2483_v1 }
 0x72b   :  { %2264 = vmatpush3.bf16.msra.mxu1 %v2652_v32 }
 0x779   :  { %v1422_v13 = vpop.permute.xlu0 %1421 }
 0x77a   :  { %1424 = vst.msk [vmem:[#allocation13 + $0x2] sm:$0x3] %vm597_vm13, %v1422_v13 }
 0x7de   :  { %v1612_v21 = vpop.f32.mrf.mxu1  ;;  %v1779_v17 = vpop.f32.mrf.mxu0 }
 0x7df   :  { %v1613_v54 = vadd.f32 %v2741_v25, %v1612_v21 }
 0x7e0   :  { %v2235_v55 = vpop.f32.mrf.mxu1  ;;  %v2259_v56 = vpop.f32.mrf.mxu0 }
 0x7e1   :  { %v1625_v57 = vsel %vm1624_vm6, %v1613_v54, 0.0 }
 0x7e2   :  { %v1615_v31 = vpop.f32.mrf.mxu1  ;;  %v1782_v58 = vpop.f32.mrf.mxu0  ;;  %v1633_v59 = vrot.slane %v1625_v57, %v2779_v60 }
 0x7e4   :  { %1634 = vrot.lane.b32.xlu0 %v1633_v59, %s2478_s23  ;;  %v2236_v1 = vpop.f32.mrf.mxu1  ;;  %v2260_v32 = vpop.f32.mrf.mxu0  ;;  %s1857_s23 = sshll.u32 %s2497_s2, 4  ;;  %s1858_s23 = int_to_ptr.vmem [resolvable:$true] %s1857_s23 }
 0x7e5   :  { %s2445_s25 = scalar_lea.vmem %s1858_s23, 64  ;;  %p2450_p3 = scmp.lt.s32.totalorder %s1858_s23, %s1858_s23 }
 0x7e6   :  { %v1739_v61 = vpop.f32.mrf.mxu1  ;;  %p2446_p2 = scmp.ne.s32.totalorder %s1858_s23, %s2445_s25  ;;  %p2451_p4 = scmp.lt.s32.totalorder %s2445_s25, %s2445_s25 }
 0x7e7   :  { %v1740_v62 = vadd.f32 %v2678_v48, %v1739_v61 }
 0x7e8   :  { %v2251_v63 = vpop.f32.mrf.mxu1  ;;  %p2452_p5 = por %p2451_p4, %p2450_p3 }
 0x7e9   :  { %v1785_v23 = vadd.f32 %v1779_v17, %v1740_v62 }
 0x7ea   :  { %v1742_v0 = vpop.f32.mrf.mxu1  ;;  %p2453_p6 = pnand %p2452_p5, %p2446_p2 }
 0x7eb   :  { %2323 = vtanh.f32 %v1785_v23 }
 0x7ec   :  { %v2252_v2 = vpop.f32.mrf.mxu1 }
 0x7f8   :  { %v2324_v3 = vpop.eup %2323 }
 0x7f9   :  { %v1787_v5 = vpack.c.bf16 %v2324_v3, %v2324_v3 }
 0x7fb   :  { %2266 = vmatmul.mubr.msk.bf16.vlgmr.msra.gmra.mxu1 %vm148_vm1, %v1787_v5 }
 0x856   :  { %v1635_v6 = vpop.permute.xlu0 %1634 }
 0x857   :  { %1637 = vst.msk [vmem:[#allocation13 + $0x2] sm:$0x3] %vm811_vm15, %v1635_v6 }
 0x8bb   :  { %v1825_v9 = vpop.f32.mrf.mxu1 }
 0x8bc   :  { %v1826_v42 = vadd.f32 %v2741_v25, %v1825_v9 }
 0x8bd   :  { %v2267_v10 = vpop.f32.mrf.mxu1 }
 0x8be   :  { %v1838_v11 = vsel %vm1837_vm0, %v1826_v42, 0.0 }
 0x8bf   :  { %v1846_v48 = vrot.slane %v1838_v11, %v2779_v60  ;;  %v1828_v15 = vpop.f32.mrf.mxu1 }
 0x8c1   :  { %1847 = vrot.lane.b32.xlu0 %v1846_v48, %s2486_s6  ;;  %v2268_v16 = vpop.f32.mrf.mxu1 }
 0x933   :  { %v1848_v4 = vpop.permute.xlu0 %1847 }
 0x934   :  { %1850 = vst.msk [vmem:[#allocation13 + $0x2] sm:$0x3] %vm1025_vm3, %v1848_v4 }
 0x935   :  { %2456 = shalt.err (!%p2453_p6)
}
 0x936   :  { %1860 = dma.vmem_to_hbm [thread:$0]  %s1858_s23, 64, %s2984_s10, [#allocation4]  }
 0x937   :  { %2473 = dma.done.wait [#allocation4], 64  }
 0x938   :  { %2474 = vsyncadd [#allocation4], 4294967232 }
 0x939   :  { %1864 = vsyncpa [#allocation3], 1 }
 0x93a   :  { %1865 = vsyncpa [#allocation6], 1 }
 0x93b   :  { %1866 = vsyncpa [#allocation9], 1 }
 0x93c   :  { %1867 = vsyncpa [#allocation12], 1 }
 0x93d   :  { %1868 = vsyncpa [#allocation4], 1 }

</bundles_post_ra>
